<compile_context>
chip_gen: v5e
topology: v5e:2x2
jax: 0.10.0
libtpu: 0.0.40
codegen_flags: <defaults>
</compile_context>

<pallas_src>
import functools

import jax
import jax.numpy as jnp
from jax import lax
from jax.experimental import pallas as pl
from jax.experimental.pallas import tpu as pltpu


# ------------------------- shape helpers -------------------------

def conv_out_len(L, k, s, p):
    return (L + 2 * p - k) // s + 1


def pool_out_len(L):  # MaxPool1d(kernel_size=2, stride=2, padding=1)
    return L // 2 + 1


# ------------------------- the fused kernel -------------------------
# Activation layout inside the kernel is l-major 2-D: row = l * N + n, lane = channel,
# with N = b * n_chunks = 8 so every row-block is exactly one sublane tile.

def _zzlet_kernel(x_ref, w1_ref, b1_ref, w2_ref, b2_ref, w3_ref, b3_ref,
                  wih0_ref, b0_ref, whh0_ref, wih1_ref, bl1_ref, whh1_ref,
                  out_ref, *, N, K1, stride, p1, dims, T, Nb, H):
    f32, bf16 = jnp.float32, jnp.bfloat16
    L1, P1, L2, P2, L3, P3 = dims
    C1, C2, C3 = 32, 64, 128
    K, PAD = 8, 4          # conv2/conv3 kernel size and padding
    H4 = 4 * H

    # ---------------- CNN: everything stays in vregs / VMEM ----------------

    # conv1: in-kernel im2col (Cin=1, stride) -> one f32 MXU pass over all L1*N rows.
    x = x_ref[...]                                                      # (N, S)
    xpad = jnp.concatenate(
        [jnp.zeros((N, p1), f32), x, jnp.zeros((N, p1), f32)], axis=1)  # (N, S+2*p1)
    patches1 = jnp.concatenate(
        [xpad[:, l * stride:l * stride + K1] for l in range(L1)], axis=0)   # (L1*N, K1)
    c1 = jnp.maximum(
        jnp.dot(patches1, w1_ref[...], preferred_element_type=f32) + b1_ref[...],
        0.0)                                                            # (L1*N, C1)

    def maxpool(y, L, C):
        # MaxPool1d(2, 2, padding=1) over the l axis of an l-major (L*N, C) activation.
        # Inputs are post-ReLU (>= 0), so PyTorch's -inf pad is equivalent to a 0 pad.
        P = L // 2 + 1
        pieces = [jnp.zeros((N, C), y.dtype), y]
        tail = 2 * P - (L + 1)
        if tail:
            pieces.append(jnp.zeros((tail * N, C), y.dtype))
        ext = jnp.concatenate(pieces, axis=0).reshape(P, 2 * N, C)
        return jnp.maximum(ext[:, :N, :], ext[:, N:, :]).reshape(P * N, C)

    def pad_blocks(y, C):
        # zero padding (PAD row-blocks each side) for the next stride-1 K=8 conv
        z = jnp.zeros((PAD * N, C), f32)
        return jnp.concatenate([z, y, z], axis=0)

    def conv_taps(pp, w_ref, b_ref, L_out, Cin):
        # stride-1 K=8 conv as per-tap MXU accumulation (no im2col patch buffer).
        # pp slices are 8-row (sublane-tile) aligned f32; cast per-tap to bf16 operands.
        acc = None
        for k in range(K):
            lhs = pp[k * N:(k + L_out) * N, :].astype(bf16)
            part = jnp.dot(lhs, w_ref[pl.ds(k * Cin, Cin), :],
                           preferred_element_type=f32)
            acc = part if acc is None else acc + part
        return jnp.maximum(acc + b_ref[...], 0.0)

    c2 = conv_taps(pad_blocks(maxpool(c1, L1, C1), C1), w2_ref, b2_ref, L2, C1)
    c3 = conv_taps(pad_blocks(maxpool(c2, L2, C2), C2), w3_ref, b3_ref, L3, C2)

    # pool3 fused with the flatten: feat[n, j*C3 + c], built from 128-lane-aligned blocks.
    # (PyTorch's channel-major flatten order is folded into the wih0 weight rows.)
    p3 = maxpool(c3, L3, C3)                                            # (P3*N, C3)
    feat = jnp.concatenate([p3[j * N:(j + 1) * N, :] for j in range(P3)], axis=1)

    # ---------------- bidirectional 2-layer LSTM ----------------
    # time = original batch index (batch_first=False quirk), batch = n_chunks.
    # fwd|bwd weights are lane-concatenated, so each projection / recurrence step is one
    # 256-lane MXU pass; h/c live in vregs (fwd rows [0:Nb], bwd rows [Nb:2Nb]).

    def run_layer(gx, whh):
        # gx: (T*Nb, 8H) hoisted input projection; cols [0:4H] fwd, [4H:8H] bwd.
        h = jnp.zeros((2 * Nb, H), f32)
        c = jnp.zeros((2 * Nb, H), f32)
        outs_f = [None] * T
        outs_b = [None] * T
        for s in range(T):
            tb = T - 1 - s
            rec = jnp.dot(h, whh, preferred_element_type=f32)           # (2Nb, 8H)
            g_f = gx[s * Nb:(s + 1) * Nb, 0:H4] + rec[0:Nb, 0:H4]
            g_b = gx[tb * Nb:(tb + 1) * Nb, H4:2 * H4] + rec[Nb:2 * Nb, H4:2 * H4]
            g = jnp.concatenate([g_f, g_b], axis=0)                     # (2Nb, 4H)
            i = jax.nn.sigmoid(g[:, 0:H])                               # PyTorch gate order
            f = jax.nn.sigmoid(g[:, H:2 * H])
            gg = jnp.tanh(g[:, 2 * H:3 * H])
            o = jax.nn.sigmoid(g[:, 3 * H:4 * H])
            c = f * c + i * gg
            h = o * jnp.tanh(c)
            outs_f[s] = h[0:Nb, :]
            outs_b[tb] = h[Nb:2 * Nb, :]
        return jnp.concatenate(outs_f, axis=0), jnp.concatenate(outs_b, axis=0)

    # layer 0: one combined (T*Nb, F0) @ (F0, 8H) input projection
    gx0 = jnp.dot(feat.astype(bf16), wih0_ref[...],
                  preferred_element_type=f32) + b0_ref[...]             # (T*Nb, 8H)
    o0f, o0b = run_layer(gx0, whh0_ref[...])

    # layer 1: time-batched input projection from the lane-concatenated layer-0 outputs
    x1 = jnp.concatenate([o0f, o0b], axis=1).astype(bf16)               # (T*Nb, 2H)
    gx1 = jnp.dot(x1, wih1_ref[...], preferred_element_type=f32) + bl1_ref[...]
    o1f, o1b = run_layer(gx1, whh1_ref[...])

    # epilogue: fused bidirectional sum rnn_out[..., :H] + rnn_out[..., H:]
    out_ref[...] = o1f + o1b                                            # (T*Nb, H)


def zzlet_fused_forward(x_chunks, prepared, cfg, T, Nb, H):
    # x_chunks: (N, S) f32 with N = T*Nb rows ordered (t, nb) = (batch, chunk).
    N, S = x_chunks.shape
    assert N == T * Nb
    K1 = cfg["sampling_rate"] // 8
    stride = cfg["stride"]
    p1 = K1 // 2

    L1 = conv_out_len(S, K1, stride, p1); P1 = pool_out_len(L1)
    L2 = conv_out_len(P1, 8, 1, 4);       P2 = pool_out_len(L2)
    L3 = conv_out_len(P2, 8, 1, 4);       P3 = pool_out_len(L3)

    w1, b1 = prepared["conv1"]
    w2, b2 = prepared["conv2"]
    w3, b3 = prepared["conv3"]

    kernel = functools.partial(
        _zzlet_kernel, N=N, K1=K1, stride=stride, p1=p1,
        dims=(L1, P1, L2, P2, L3, P3), T=T, Nb=Nb, H=H)

    return pl.pallas_call(
        kernel,
        out_shape=jax.ShapeDtypeStruct((T * Nb, H), jnp.float32),
        compiler_params=pltpu.CompilerParams(vmem_limit_bytes=32 * 1024 * 1024),
    )(x_chunks, w1, b1, w2, b2, w3, b3,
      prepared["wih0"], prepared["b0"], prepared["whh0"],
      prepared["wih1"], prepared["bl1"], prepared["whh1"])


# ------------------------- top-level forward -------------------------

def zzlet_forward(x, prepared, cfg):
    # x: (b, 1, L) exactly like the PyTorch module (NCL).
    b = x.shape[0]
    S = cfg["sampling_rate"]
    n_chunks = x.shape[-1] // S
    H = cfg["rnn_dim"]

    # torch.split(x, sampling_rate, dim=-1); flatten (b, chunk) into one sample axis.
    xc = x.reshape(b, n_chunks, S).reshape(b * n_chunks, S)
    out = zzlet_fused_forward(xc, prepared, cfg, T=b, Nb=n_chunks, H=H)  # (b*n_chunks, H)
    return out.reshape(b, n_chunks * H)


# ------------------------- parameters (PyTorch layout) + kernel-layout prep -------------------------

def init_params(key, cfg):
    S, stride, H = cfg["sampling_rate"], cfg["stride"], cfg["rnn_dim"]
    K1 = S // 8
    keys = iter(jax.random.split(key, 64))

    def conv_w(cout, cin, k):
        return 0.1 * jax.random.normal(next(keys), (cout, cin, k), jnp.float32)

    def bn(c):
        return dict(
            gamma=1.0 + 0.1 * jax.random.normal(next(keys), (c,), jnp.float32),
            beta=0.1 * jax.random.normal(next(keys), (c,), jnp.float32),
            mean=0.1 * jax.random.normal(next(keys), (c,), jnp.float32),
            var=1.0 + 0.1 * jnp.abs(jax.random.normal(next(keys), (c,), jnp.float32)),
        )

    L1 = conv_out_len(S, K1, stride, K1 // 2); P1 = pool_out_len(L1)
    L2 = conv_out_len(P1, 8, 1, 4);            P2 = pool_out_len(L2)
    L3 = conv_out_len(P2, 8, 1, 4);            P3 = pool_out_len(L3)
    cnn_o_size = 128 * P3

    kb = 1.0 / (H ** 0.5)

    def lstm_dir(in_size):
        return dict(
            wih=jax.random.uniform(next(keys), (4 * H, in_size), jnp.float32, -kb, kb),
            whh=jax.random.uniform(next(keys), (4 * H, H), jnp.float32, -kb, kb),
            bih=jax.random.uniform(next(keys), (4 * H,), jnp.float32, -kb, kb),
            bhh=jax.random.uniform(next(keys), (4 * H,), jnp.float32, -kb, kb),
        )

    params = dict(
        conv1_w=conv_w(32, 1, K1), bn1=bn(32),
        conv2_w=conv_w(64, 32, 8), bn2=bn(64),
        conv3_w=conv_w(128, 64, 8), bn3=bn(128),
        lstm=[[lstm_dir(cnn_o_size), lstm_dir(cnn_o_size)],
              [lstm_dir(2 * H), lstm_dir(2 * H)]],
    )
    return params, cnn_o_size, P3


def fold_bn(bn, eps=1e-5):
    scale = bn["gamma"] / jnp.sqrt(bn["var"] + eps)
    bias = bn["beta"] - bn["mean"] * scale
    return scale.reshape(1, -1), bias.reshape(1, -1)


def prepare_params(params, cfg, P3):
    H = cfg["rnn_dim"]
    C3 = 128
    f32, bf16 = jnp.float32, jnp.bfloat16

    def conv_fold(w, bn, out_dtype):
        # (Cout, Cin, K) -> im2col (K*Cin, Cout) with the BN scale folded in (f32 fold,
        # then an optional bf16 cast); the BN bias stays separate (added post-matmul).
        Cout, Cin, K = w.shape
        w2 = jnp.transpose(w, (2, 1, 0)).reshape(K * Cin, Cout)
        scale, bias = fold_bn(bn)
        return (w2 * scale).astype(out_dtype), bias.astype(f32)

    w1, b1 = conv_fold(params["conv1_w"], params["bn1"], f32)   # conv1 stays f32 (accuracy)
    w2, b2 = conv_fold(params["conv2_w"], params["bn2"], bf16)
    w3, b3 = conv_fold(params["conv3_w"], params["bn3"], bf16)

    def dir_mats(d, permute_feat):
        wih_t = d["wih"].T                       # (in, 4H)
        if permute_feat:
            # Kernel emits features in (l, c) order (index l*C3 + c); PyTorch's
            # x.view([b, -1]) on an NCL tensor is (c, l) order (c*P3 + l).  Fold the
            # permutation into the input-projection weight rows.
            wih_t = wih_t.reshape(C3, P3, 4 * H).transpose(1, 0, 2).reshape(P3 * C3, 4 * H)
        whh_t = d["whh"].T                       # (H, 4H)
        b = (d["bih"] + d["bhh"]).reshape(1, 4 * H)
        return wih_t, whh_t, b

    wi0f, wh0f, bb0f = dir_mats(params["lstm"][0][0], True)
    wi0b, wh0b, bb0b = dir_mats(params["lstm"][0][1], True)
    wi1f, wh1f, bb1f = dir_mats(params["lstm"][1][0], False)
    wi1b, wh1b, bb1b = dir_mats(params["lstm"][1][1], False)

    # Lane-concatenate fwd|bwd so each LSTM matmul is a single 8H(=256)-lane MXU pass.
    return dict(
        conv1=(w1, b1), conv2=(w2, b2), conv3=(w3, b3),
        wih0=jnp.concatenate([wi0f, wi0b], axis=1).astype(bf16),   # (F0, 8H) bf16
        b0=jnp.concatenate([bb0f, bb0b], axis=1),                  # (1, 8H)  f32
        whh0=jnp.concatenate([wh0f, wh0b], axis=1),                # (H, 8H)  f32
        wih1=jnp.concatenate([wi1f, wi1b], axis=1).astype(bf16),   # (2H, 8H) bf16
        bl1=jnp.concatenate([bb1f, bb1b], axis=1),                 # (1, 8H)  f32
        whh1=jnp.concatenate([wh1f, wh1b], axis=1),                # (H, 8H)  f32
    )


# ------------------------- pure-JAX reference (PyTorch semantics) -------------------------

def reference_forward(x, params, cfg):
    b = x.shape[0]
    S, stride, H = cfg["sampling_rate"], cfg["stride"], cfg["rnn_dim"]
    n_chunks = x.shape[-1] // S
    K1 = S // 8
    bf16, f32 = jnp.bfloat16, jnp.float32

    def conv_bn_relu_pool(x_nlc, w, bn, K, s, p, low_precision):
        N, L, Cin = x_nlc.shape
        Cout = w.shape[0]
        xp = jnp.pad(x_nlc, ((0, 0), (p, p), (0, 0)))
        L_out = (L + 2 * p - K) // s + 1
        cols = [xp[:, k:k + s * (L_out - 1) + 1:s, :] for k in range(K)]
        patches = jnp.stack(cols, axis=2).reshape(N, L_out, K * Cin)
        w2 = jnp.transpose(w, (2, 1, 0)).reshape(K * Cin, Cout)
        if low_precision:
            patches, w2 = patches.astype(bf16), w2.astype(bf16)
        y = jnp.einsum("nlk,kc->nlc", patches, w2, preferred_element_type=f32)
        scale, bias = fold_bn(bn)
        y = jnp.maximum(y * scale + bias, 0.0)
        neg = jnp.full((N, 1, Cout), -jnp.inf, y.dtype)
        yp = jnp.concatenate([neg, y, neg], axis=1)
        Lp = L_out // 2 + 1
        return jnp.maximum(yp[:, 0:2 * Lp:2, :], yp[:, 1:2 * Lp:2, :])

    xc = x.reshape(b, n_chunks, S).reshape(b * n_chunks, S, 1)
    h = conv_bn_relu_pool(xc, params["conv1_w"], params["bn1"], K1, stride, K1 // 2, False)
    h = conv_bn_relu_pool(h, params["conv2_w"], params["bn2"], 8, 1, 4, True)
    h = conv_bn_relu_pool(h, params["conv3_w"], params["bn3"], 8, 1, 4, True)
    Nn, L3p, C3 = h.shape
    feat = jnp.transpose(h, (0, 2, 1)).reshape(b, n_chunks, C3 * L3p)  # channel-major flatten

    def lstm_dir(seq, d, reverse):
        wih, whh = d["wih"], d["whh"]
        bias = d["bih"] + d["bhh"]

        def cell(carry, x_t):
            h_prev, c_prev = carry
            gates = (jnp.dot(x_t.astype(bf16), wih.T.astype(bf16),
                             preferred_element_type=f32)
                     + jnp.dot(h_prev, whh.T) + bias)
            i = jax.nn.sigmoid(gates[:, 0:H])
            f = jax.nn.sigmoid(gates[:, H:2 * H])
            g = jnp.tanh(gates[:, 2 * H:3 * H])
            o = jax.nn.sigmoid(gates[:, 3 * H:4 * H])
            c_new = f * c_prev + i * g
            h_new = o * jnp.tanh(c_new)
            return (h_new, c_new), h_new

        Nb = seq.shape[1]
        init = (jnp.zeros((Nb, H), f32), jnp.zeros((Nb, H), f32))
        xs = seq[::-1] if reverse else seq
        _, hs = lax.scan(cell, init, xs)
        return hs[::-1] if reverse else hs

    layer_in = feat  # (b, n_chunks, F): time = b, batch = n_chunks (batch_first=False quirk)
    for layer in params["lstm"]:
        fwd = lstm_dir(layer_in, layer[0], False)
        bwd = lstm_dir(layer_in, layer[1], True)
        layer_in = jnp.concatenate([fwd, bwd], axis=-1)
    out = layer_in[:, :, :H] + layer_in[:, :, H:]
    return out.reshape(b, -1)


# ------------------------- demo -------------------------

if __name__ == "__main__":
    cfg = dict(sampling_rate=64, stride=4, rnn_dim=32)
    key = jax.random.PRNGKey(0)
    pkey, xkey = jax.random.split(key)

    params, cnn_o_size, P3 = init_params(pkey, cfg)
    assert cnn_o_size == 128 * P3
    prepared = prepare_params(params, cfg, P3)

    b, n_chunks = 2, 4
    x = jax.random.normal(xkey, (b, 1, cfg["sampling_rate"] * n_chunks), jnp.float32)

    fwd = jax.jit(lambda xx, pp: zzlet_forward(xx, pp, cfg))
    out = jax.block_until_ready(fwd(x, prepared))

    assert out.shape == (b, n_chunks * cfg["rnn_dim"]), out.shape
    assert bool(jnp.all(jnp.isfinite(out)))

    # Validate against a plain-JAX reimplementation of the PyTorch forward pass
    # (same bf16-operand / f32-accumulate matmul policy as the kernel).
    ref = jax.block_until_ready(
        jax.jit(lambda xx, pp: reference_forward(xx, pp, cfg))(x, params))
    err = float(jnp.max(jnp.abs(out - ref)))
    assert err < 5e-2, f"max abs err vs reference: {err}"

    print("KERNEL_OK")
</pallas_src>

<mosaic_0001>
module attributes {stable_mosaic.version = 11 : i64} {
  func.func @_zzlet_kernel(%arg0: memref<8x64xf32, #tpu.memory_space<vmem>>, %arg1: memref<8x32xf32, #tpu.memory_space<vmem>>, %arg2: memref<1x32xf32, #tpu.memory_space<vmem>>, %arg3: memref<256x64xbf16, #tpu.memory_space<vmem>>, %arg4: memref<1x64xf32, #tpu.memory_space<vmem>>, %arg5: memref<512x128xbf16, #tpu.memory_space<vmem>>, %arg6: memref<1x128xf32, #tpu.memory_space<vmem>>, %arg7: memref<512x256xbf16, #tpu.memory_space<vmem>>, %arg8: memref<1x256xf32, #tpu.memory_space<vmem>>, %arg9: memref<32x256xf32, #tpu.memory_space<vmem>>, %arg10: memref<64x256xbf16, #tpu.memory_space<vmem>>, %arg11: memref<1x256xf32, #tpu.memory_space<vmem>>, %arg12: memref<32x256xf32, #tpu.memory_space<vmem>>, %arg13: memref<8x32xf32, #tpu.memory_space<vmem>>) attributes {dimension_semantics = [], scalar_prefetch = 0 : i64, scratch_operands = 0 : i64, tpu.core_type = #tpu.core_type<tc>} {
    %c0 = arith.constant 0 : index
    %c0_0 = arith.constant 0 : index
    %0 = vector.load %arg0[%c0, %c0_0] : memref<8x64xf32, #tpu.memory_space<vmem>>, vector<8x64xf32>
    %cst = arith.constant 0.000000e+00 : f32
    %1 = vector.broadcast %cst : f32 to vector<8x4xf32>
    %cst_1 = arith.constant 0.000000e+00 : f32
    %2 = vector.broadcast %cst_1 : f32 to vector<8x4xf32>
    %3 = tpu.concatenate %1, %0, %2 in 1 : vector<8x4xf32>, vector<8x64xf32>, vector<8x4xf32> -> vector<8x72xf32>
    %4 = vector.extract_strided_slice %3 {offsets = [0, 0], sizes = [8, 8], strides = [1, 1]} : vector<8x72xf32> to vector<8x8xf32>
    %5 = vector.extract_strided_slice %3 {offsets = [0, 4], sizes = [8, 8], strides = [1, 1]} : vector<8x72xf32> to vector<8x8xf32>
    %6 = vector.extract_strided_slice %3 {offsets = [0, 8], sizes = [8, 8], strides = [1, 1]} : vector<8x72xf32> to vector<8x8xf32>
    %7 = vector.extract_strided_slice %3 {offsets = [0, 12], sizes = [8, 8], strides = [1, 1]} : vector<8x72xf32> to vector<8x8xf32>
    %8 = vector.extract_strided_slice %3 {offsets = [0, 16], sizes = [8, 8], strides = [1, 1]} : vector<8x72xf32> to vector<8x8xf32>
    %9 = vector.extract_strided_slice %3 {offsets = [0, 20], sizes = [8, 8], strides = [1, 1]} : vector<8x72xf32> to vector<8x8xf32>
    %10 = vector.extract_strided_slice %3 {offsets = [0, 24], sizes = [8, 8], strides = [1, 1]} : vector<8x72xf32> to vector<8x8xf32>
    %11 = vector.extract_strided_slice %3 {offsets = [0, 28], sizes = [8, 8], strides = [1, 1]} : vector<8x72xf32> to vector<8x8xf32>
    %12 = vector.extract_strided_slice %3 {offsets = [0, 32], sizes = [8, 8], strides = [1, 1]} : vector<8x72xf32> to vector<8x8xf32>
    %13 = vector.extract_strided_slice %3 {offsets = [0, 36], sizes = [8, 8], strides = [1, 1]} : vector<8x72xf32> to vector<8x8xf32>
    %14 = vector.extract_strided_slice %3 {offsets = [0, 40], sizes = [8, 8], strides = [1, 1]} : vector<8x72xf32> to vector<8x8xf32>
    %15 = vector.extract_strided_slice %3 {offsets = [0, 44], sizes = [8, 8], strides = [1, 1]} : vector<8x72xf32> to vector<8x8xf32>
    %16 = vector.extract_strided_slice %3 {offsets = [0, 48], sizes = [8, 8], strides = [1, 1]} : vector<8x72xf32> to vector<8x8xf32>
    %17 = vector.extract_strided_slice %3 {offsets = [0, 52], sizes = [8, 8], strides = [1, 1]} : vector<8x72xf32> to vector<8x8xf32>
    %18 = vector.extract_strided_slice %3 {offsets = [0, 56], sizes = [8, 8], strides = [1, 1]} : vector<8x72xf32> to vector<8x8xf32>
    %19 = vector.extract_strided_slice %3 {offsets = [0, 60], sizes = [8, 8], strides = [1, 1]} : vector<8x72xf32> to vector<8x8xf32>
    %20 = vector.extract_strided_slice %3 {offsets = [0, 64], sizes = [8, 8], strides = [1, 1]} : vector<8x72xf32> to vector<8x8xf32>
    %21 = tpu.concatenate %4, %5, %6, %7, %8, %9, %10, %11, %12, %13, %14, %15, %16, %17, %18, %19 in 0 : vector<8x8xf32>, vector<8x8xf32>, vector<8x8xf32>, vector<8x8xf32>, vector<8x8xf32>, vector<8x8xf32>, vector<8x8xf32>, vector<8x8xf32>, vector<8x8xf32>, vector<8x8xf32>, vector<8x8xf32>, vector<8x8xf32>, vector<8x8xf32>, vector<8x8xf32>, vector<8x8xf32>, vector<8x8xf32> -> vector<128x8xf32>
    %22 = tpu.concatenate %21, %20 in 0 : vector<128x8xf32>, vector<8x8xf32> -> vector<136x8xf32>
    %c0_2 = arith.constant 0 : index
    %c0_3 = arith.constant 0 : index
    %23 = vector.load %arg1[%c0_2, %c0_3] : memref<8x32xf32, #tpu.memory_space<vmem>>, vector<8x32xf32>
    %cst_4 = arith.constant dense<0.000000e+00> : vector<136x32xf32>
    %24 = tpu.matmul %22, %23, %cst_4 {dimension_numbers = #tpu.dot_dimension_numbers<[1], [0], [0], [1], [0, 0, 1, 1], [], []>} : vector<136x8xf32>, vector<8x32xf32>, vector<136x32xf32> -> vector<136x32xf32>
    %c0_5 = arith.constant 0 : index
    %c0_6 = arith.constant 0 : index
    %25 = vector.load %arg2[%c0_5, %c0_6] : memref<1x32xf32, #tpu.memory_space<vmem>>, vector<1x32xf32>
    %26 = vector.broadcast %25 : vector<1x32xf32> to vector<136x32xf32>
    %27 = arith.addf %24, %26 : vector<136x32xf32>
    %cst_7 = arith.constant 0.000000e+00 : f32
    %28 = vector.broadcast %cst_7 : f32 to vector<136x32xf32>
    %29 = arith.maximumf %27, %28 : vector<136x32xf32>
    %cst_8 = arith.constant 0.000000e+00 : f32
    %30 = vector.broadcast %cst_8 : f32 to vector<8x32xf32>
    %31 = tpu.concatenate %30, %29 in 0 : vector<8x32xf32>, vector<136x32xf32> -> vector<144x32xf32>
    %32 = vector.shape_cast %31 : vector<144x32xf32> to vector<9x16x32xf32>
    %33 = vector.extract_strided_slice %32 {offsets = [0, 0, 0], sizes = [9, 8, 32], strides = [1, 1, 1]} : vector<9x16x32xf32> to vector<9x8x32xf32>
    %34 = vector.extract_strided_slice %32 {offsets = [0, 8, 0], sizes = [9, 8, 32], strides = [1, 1, 1]} : vector<9x16x32xf32> to vector<9x8x32xf32>
    %35 = arith.maximumf %33, %34 : vector<9x8x32xf32>
    %36 = vector.shape_cast %35 : vector<9x8x32xf32> to vector<72x32xf32>
    %cst_9 = arith.constant 0.000000e+00 : f32
    %37 = vector.broadcast %cst_9 : f32 to vector<32x32xf32>
    %38 = tpu.concatenate %37, %36, %37 in 0 : vector<32x32xf32>, vector<72x32xf32>, vector<32x32xf32> -> vector<136x32xf32>
    %39 = vector.extract_strided_slice %38 {offsets = [0, 0], sizes = [80, 32], strides = [1, 1]} : vector<136x32xf32> to vector<80x32xf32>
    %40 = arith.truncf %39 : vector<80x32xf32> to vector<80x32xbf16>
    %c0_10 = arith.constant 0 : index
    %c0_11 = arith.constant 0 : index
    %41 = vector.load %arg3[%c0_10, %c0_11] : memref<256x64xbf16, #tpu.memory_space<vmem>>, vector<32x64xbf16>
    %cst_12 = arith.constant dense<0.000000e+00> : vector<80x64xf32>
    %42 = tpu.matmul %40, %41, %cst_12 {dimension_numbers = #tpu.dot_dimension_numbers<[1], [0], [0], [1], [0, 0, 1, 1], [], []>} : vector<80x32xbf16>, vector<32x64xbf16>, vector<80x64xf32> -> vector<80x64xf32>
    %43 = vector.extract_strided_slice %38 {offsets = [8, 0], sizes = [80, 32], strides = [1, 1]} : vector<136x32xf32> to vector<80x32xf32>
    %44 = arith.truncf %43 : vector<80x32xf32> to vector<80x32xbf16>
    %c32 = arith.constant 32 : index
    %c0_13 = arith.constant 0 : index
    %45 = vector.load %arg3[%c32, %c0_13] : memref<256x64xbf16, #tpu.memory_space<vmem>>, vector<32x64xbf16>
    %cst_14 = arith.constant dense<0.000000e+00> : vector<80x64xf32>
    %46 = tpu.matmul %44, %45, %cst_14 {dimension_numbers = #tpu.dot_dimension_numbers<[1], [0], [0], [1], [0, 0, 1, 1], [], []>} : vector<80x32xbf16>, vector<32x64xbf16>, vector<80x64xf32> -> vector<80x64xf32>
    %47 = arith.addf %42, %46 : vector<80x64xf32>
    %48 = vector.extract_strided_slice %38 {offsets = [16, 0], sizes = [80, 32], strides = [1, 1]} : vector<136x32xf32> to vector<80x32xf32>
    %49 = arith.truncf %48 : vector<80x32xf32> to vector<80x32xbf16>
    %c64 = arith.constant 64 : index
    %c0_15 = arith.constant 0 : index
    %50 = vector.load %arg3[%c64, %c0_15] : memref<256x64xbf16, #tpu.memory_space<vmem>>, vector<32x64xbf16>
    %cst_16 = arith.constant dense<0.000000e+00> : vector<80x64xf32>
    %51 = tpu.matmul %49, %50, %cst_16 {dimension_numbers = #tpu.dot_dimension_numbers<[1], [0], [0], [1], [0, 0, 1, 1], [], []>} : vector<80x32xbf16>, vector<32x64xbf16>, vector<80x64xf32> -> vector<80x64xf32>
    %52 = arith.addf %47, %51 : vector<80x64xf32>
    %53 = vector.extract_strided_slice %38 {offsets = [24, 0], sizes = [80, 32], strides = [1, 1]} : vector<136x32xf32> to vector<80x32xf32>
    %54 = arith.truncf %53 : vector<80x32xf32> to vector<80x32xbf16>
    %c96 = arith.constant 96 : index
    %c0_17 = arith.constant 0 : index
    %55 = vector.load %arg3[%c96, %c0_17] : memref<256x64xbf16, #tpu.memory_space<vmem>>, vector<32x64xbf16>
    %cst_18 = arith.constant dense<0.000000e+00> : vector<80x64xf32>
    %56 = tpu.matmul %54, %55, %cst_18 {dimension_numbers = #tpu.dot_dimension_numbers<[1], [0], [0], [1], [0, 0, 1, 1], [], []>} : vector<80x32xbf16>, vector<32x64xbf16>, vector<80x64xf32> -> vector<80x64xf32>
    %57 = arith.addf %52, %56 : vector<80x64xf32>
    %58 = vector.extract_strided_slice %38 {offsets = [32, 0], sizes = [80, 32], strides = [1, 1]} : vector<136x32xf32> to vector<80x32xf32>
    %59 = arith.truncf %58 : vector<80x32xf32> to vector<80x32xbf16>
    %c128 = arith.constant 128 : index
    %c0_19 = arith.constant 0 : index
    %60 = vector.load %arg3[%c128, %c0_19] : memref<256x64xbf16, #tpu.memory_space<vmem>>, vector<32x64xbf16>
    %cst_20 = arith.constant dense<0.000000e+00> : vector<80x64xf32>
    %61 = tpu.matmul %59, %60, %cst_20 {dimension_numbers = #tpu.dot_dimension_numbers<[1], [0], [0], [1], [0, 0, 1, 1], [], []>} : vector<80x32xbf16>, vector<32x64xbf16>, vector<80x64xf32> -> vector<80x64xf32>
    %62 = arith.addf %57, %61 : vector<80x64xf32>
    %63 = vector.extract_strided_slice %38 {offsets = [40, 0], sizes = [80, 32], strides = [1, 1]} : vector<136x32xf32> to vector<80x32xf32>
    %64 = arith.truncf %63 : vector<80x32xf32> to vector<80x32xbf16>
    %c160 = arith.constant 160 : index
    %c0_21 = arith.constant 0 : index
    %65 = vector.load %arg3[%c160, %c0_21] : memref<256x64xbf16, #tpu.memory_space<vmem>>, vector<32x64xbf16>
    %cst_22 = arith.constant dense<0.000000e+00> : vector<80x64xf32>
    %66 = tpu.matmul %64, %65, %cst_22 {dimension_numbers = #tpu.dot_dimension_numbers<[1], [0], [0], [1], [0, 0, 1, 1], [], []>} : vector<80x32xbf16>, vector<32x64xbf16>, vector<80x64xf32> -> vector<80x64xf32>
    %67 = arith.addf %62, %66 : vector<80x64xf32>
    %68 = vector.extract_strided_slice %38 {offsets = [48, 0], sizes = [80, 32], strides = [1, 1]} : vector<136x32xf32> to vector<80x32xf32>
    %69 = arith.truncf %68 : vector<80x32xf32> to vector<80x32xbf16>
    %c192 = arith.constant 192 : index
    %c0_23 = arith.constant 0 : index
    %70 = vector.load %arg3[%c192, %c0_23] : memref<256x64xbf16, #tpu.memory_space<vmem>>, vector<32x64xbf16>
    %cst_24 = arith.constant dense<0.000000e+00> : vector<80x64xf32>
    %71 = tpu.matmul %69, %70, %cst_24 {dimension_numbers = #tpu.dot_dimension_numbers<[1], [0], [0], [1], [0, 0, 1, 1], [], []>} : vector<80x32xbf16>, vector<32x64xbf16>, vector<80x64xf32> -> vector<80x64xf32>
    %72 = arith.addf %67, %71 : vector<80x64xf32>
    %73 = vector.extract_strided_slice %38 {offsets = [56, 0], sizes = [80, 32], strides = [1, 1]} : vector<136x32xf32> to vector<80x32xf32>
    %74 = arith.truncf %73 : vector<80x32xf32> to vector<80x32xbf16>
    %c224 = arith.constant 224 : index
    %c0_25 = arith.constant 0 : index
    %75 = vector.load %arg3[%c224, %c0_25] : memref<256x64xbf16, #tpu.memory_space<vmem>>, vector<32x64xbf16>
    %cst_26 = arith.constant dense<0.000000e+00> : vector<80x64xf32>
    %76 = tpu.matmul %74, %75, %cst_26 {dimension_numbers = #tpu.dot_dimension_numbers<[1], [0], [0], [1], [0, 0, 1, 1], [], []>} : vector<80x32xbf16>, vector<32x64xbf16>, vector<80x64xf32> -> vector<80x64xf32>
    %77 = arith.addf %72, %76 : vector<80x64xf32>
    %c0_27 = arith.constant 0 : index
    %c0_28 = arith.constant 0 : index
    %78 = vector.load %arg4[%c0_27, %c0_28] : memref<1x64xf32, #tpu.memory_space<vmem>>, vector<1x64xf32>
    %79 = vector.broadcast %78 : vector<1x64xf32> to vector<80x64xf32>
    %80 = arith.addf %77, %79 : vector<80x64xf32>
    %cst_29 = arith.constant 0.000000e+00 : f32
    %81 = vector.broadcast %cst_29 : f32 to vector<80x64xf32>
    %82 = arith.maximumf %80, %81 : vector<80x64xf32>
    %cst_30 = arith.constant 0.000000e+00 : f32
    %83 = vector.broadcast %cst_30 : f32 to vector<8x64xf32>
    %cst_31 = arith.constant 0.000000e+00 : f32
    %84 = vector.broadcast %cst_31 : f32 to vector<8x64xf32>
    %85 = tpu.concatenate %83, %82, %84 in 0 : vector<8x64xf32>, vector<80x64xf32>, vector<8x64xf32> -> vector<96x64xf32>
    %86 = vector.shape_cast %85 : vector<96x64xf32> to vector<6x16x64xf32>
    %87 = vector.extract_strided_slice %86 {offsets = [0, 0, 0], sizes = [6, 8, 64], strides = [1, 1, 1]} : vector<6x16x64xf32> to vector<6x8x64xf32>
    %88 = vector.extract_strided_slice %86 {offsets = [0, 8, 0], sizes = [6, 8, 64], strides = [1, 1, 1]} : vector<6x16x64xf32> to vector<6x8x64xf32>
    %89 = arith.maximumf %87, %88 : vector<6x8x64xf32>
    %90 = vector.shape_cast %89 : vector<6x8x64xf32> to vector<48x64xf32>
    %cst_32 = arith.constant 0.000000e+00 : f32
    %91 = vector.broadcast %cst_32 : f32 to vector<32x64xf32>
    %92 = tpu.concatenate %91, %90, %91 in 0 : vector<32x64xf32>, vector<48x64xf32>, vector<32x64xf32> -> vector<112x64xf32>
    %93 = vector.extract_strided_slice %92 {offsets = [0, 0], sizes = [56, 64], strides = [1, 1]} : vector<112x64xf32> to vector<56x64xf32>
    %94 = arith.truncf %93 : vector<56x64xf32> to vector<56x64xbf16>
    %c0_33 = arith.constant 0 : index
    %c0_34 = arith.constant 0 : index
    %95 = vector.load %arg5[%c0_33, %c0_34] : memref<512x128xbf16, #tpu.memory_space<vmem>>, vector<64x128xbf16>
    %cst_35 = arith.constant dense<0.000000e+00> : vector<56x128xf32>
    %96 = tpu.matmul %94, %95, %cst_35 {dimension_numbers = #tpu.dot_dimension_numbers<[1], [0], [0], [1], [0, 0, 1, 1], [], []>} : vector<56x64xbf16>, vector<64x128xbf16>, vector<56x128xf32> -> vector<56x128xf32>
    %97 = vector.extract_strided_slice %92 {offsets = [8, 0], sizes = [56, 64], strides = [1, 1]} : vector<112x64xf32> to vector<56x64xf32>
    %98 = arith.truncf %97 : vector<56x64xf32> to vector<56x64xbf16>
    %c64_36 = arith.constant 64 : index
    %c0_37 = arith.constant 0 : index
    %99 = vector.load %arg5[%c64_36, %c0_37] : memref<512x128xbf16, #tpu.memory_space<vmem>>, vector<64x128xbf16>
    %cst_38 = arith.constant dense<0.000000e+00> : vector<56x128xf32>
    %100 = tpu.matmul %98, %99, %cst_38 {dimension_numbers = #tpu.dot_dimension_numbers<[1], [0], [0], [1], [0, 0, 1, 1], [], []>} : vector<56x64xbf16>, vector<64x128xbf16>, vector<56x128xf32> -> vector<56x128xf32>
    %101 = arith.addf %96, %100 : vector<56x128xf32>
    %102 = vector.extract_strided_slice %92 {offsets = [16, 0], sizes = [56, 64], strides = [1, 1]} : vector<112x64xf32> to vector<56x64xf32>
    %103 = arith.truncf %102 : vector<56x64xf32> to vector<56x64xbf16>
    %c128_39 = arith.constant 128 : index
    %c0_40 = arith.constant 0 : index
    %104 = vector.load %arg5[%c128_39, %c0_40] : memref<512x128xbf16, #tpu.memory_space<vmem>>, vector<64x128xbf16>
    %cst_41 = arith.constant dense<0.000000e+00> : vector<56x128xf32>
    %105 = tpu.matmul %103, %104, %cst_41 {dimension_numbers = #tpu.dot_dimension_numbers<[1], [0], [0], [1], [0, 0, 1, 1], [], []>} : vector<56x64xbf16>, vector<64x128xbf16>, vector<56x128xf32> -> vector<56x128xf32>
    %106 = arith.addf %101, %105 : vector<56x128xf32>
    %107 = vector.extract_strided_slice %92 {offsets = [24, 0], sizes = [56, 64], strides = [1, 1]} : vector<112x64xf32> to vector<56x64xf32>
    %108 = arith.truncf %107 : vector<56x64xf32> to vector<56x64xbf16>
    %c192_42 = arith.constant 192 : index
    %c0_43 = arith.constant 0 : index
    %109 = vector.load %arg5[%c192_42, %c0_43] : memref<512x128xbf16, #tpu.memory_space<vmem>>, vector<64x128xbf16>
    %cst_44 = arith.constant dense<0.000000e+00> : vector<56x128xf32>
    %110 = tpu.matmul %108, %109, %cst_44 {dimension_numbers = #tpu.dot_dimension_numbers<[1], [0], [0], [1], [0, 0, 1, 1], [], []>} : vector<56x64xbf16>, vector<64x128xbf16>, vector<56x128xf32> -> vector<56x128xf32>
    %111 = arith.addf %106, %110 : vector<56x128xf32>
    %112 = vector.extract_strided_slice %92 {offsets = [32, 0], sizes = [56, 64], strides = [1, 1]} : vector<112x64xf32> to vector<56x64xf32>
    %113 = arith.truncf %112 : vector<56x64xf32> to vector<56x64xbf16>
    %c256 = arith.constant 256 : index
    %c0_45 = arith.constant 0 : index
    %114 = vector.load %arg5[%c256, %c0_45] : memref<512x128xbf16, #tpu.memory_space<vmem>>, vector<64x128xbf16>
    %cst_46 = arith.constant dense<0.000000e+00> : vector<56x128xf32>
    %115 = tpu.matmul %113, %114, %cst_46 {dimension_numbers = #tpu.dot_dimension_numbers<[1], [0], [0], [1], [0, 0, 1, 1], [], []>} : vector<56x64xbf16>, vector<64x128xbf16>, vector<56x128xf32> -> vector<56x128xf32>
    %116 = arith.addf %111, %115 : vector<56x128xf32>
    %117 = vector.extract_strided_slice %92 {offsets = [40, 0], sizes = [56, 64], strides = [1, 1]} : vector<112x64xf32> to vector<56x64xf32>
    %118 = arith.truncf %117 : vector<56x64xf32> to vector<56x64xbf16>
    %c320 = arith.constant 320 : index
    %c0_47 = arith.constant 0 : index
    %119 = vector.load %arg5[%c320, %c0_47] : memref<512x128xbf16, #tpu.memory_space<vmem>>, vector<64x128xbf16>
    %cst_48 = arith.constant dense<0.000000e+00> : vector<56x128xf32>
    %120 = tpu.matmul %118, %119, %cst_48 {dimension_numbers = #tpu.dot_dimension_numbers<[1], [0], [0], [1], [0, 0, 1, 1], [], []>} : vector<56x64xbf16>, vector<64x128xbf16>, vector<56x128xf32> -> vector<56x128xf32>
    %121 = arith.addf %116, %120 : vector<56x128xf32>
    %122 = vector.extract_strided_slice %92 {offsets = [48, 0], sizes = [56, 64], strides = [1, 1]} : vector<112x64xf32> to vector<56x64xf32>
    %123 = arith.truncf %122 : vector<56x64xf32> to vector<56x64xbf16>
    %c384 = arith.constant 384 : index
    %c0_49 = arith.constant 0 : index
    %124 = vector.load %arg5[%c384, %c0_49] : memref<512x128xbf16, #tpu.memory_space<vmem>>, vector<64x128xbf16>
    %cst_50 = arith.constant dense<0.000000e+00> : vector<56x128xf32>
    %125 = tpu.matmul %123, %124, %cst_50 {dimension_numbers = #tpu.dot_dimension_numbers<[1], [0], [0], [1], [0, 0, 1, 1], [], []>} : vector<56x64xbf16>, vector<64x128xbf16>, vector<56x128xf32> -> vector<56x128xf32>
    %126 = arith.addf %121, %125 : vector<56x128xf32>
    %127 = vector.extract_strided_slice %92 {offsets = [56, 0], sizes = [56, 64], strides = [1, 1]} : vector<112x64xf32> to vector<56x64xf32>
    %128 = arith.truncf %127 : vector<56x64xf32> to vector<56x64xbf16>
    %c448 = arith.constant 448 : index
    %c0_51 = arith.constant 0 : index
    %129 = vector.load %arg5[%c448, %c0_51] : memref<512x128xbf16, #tpu.memory_space<vmem>>, vector<64x128xbf16>
    %cst_52 = arith.constant dense<0.000000e+00> : vector<56x128xf32>
    %130 = tpu.matmul %128, %129, %cst_52 {dimension_numbers = #tpu.dot_dimension_numbers<[1], [0], [0], [1], [0, 0, 1, 1], [], []>} : vector<56x64xbf16>, vector<64x128xbf16>, vector<56x128xf32> -> vector<56x128xf32>
    %131 = arith.addf %126, %130 : vector<56x128xf32>
    %c0_53 = arith.constant 0 : index
    %c0_54 = arith.constant 0 : index
    %132 = vector.load %arg6[%c0_53, %c0_54] : memref<1x128xf32, #tpu.memory_space<vmem>>, vector<1x128xf32>
    %133 = vector.broadcast %132 : vector<1x128xf32> to vector<56x128xf32>
    %134 = arith.addf %131, %133 : vector<56x128xf32>
    %cst_55 = arith.constant 0.000000e+00 : f32
    %135 = vector.broadcast %cst_55 : f32 to vector<56x128xf32>
    %136 = arith.maximumf %134, %135 : vector<56x128xf32>
    %cst_56 = arith.constant 0.000000e+00 : f32
    %137 = vector.broadcast %cst_56 : f32 to vector<8x128xf32>
    %138 = tpu.concatenate %137, %136 in 0 : vector<8x128xf32>, vector<56x128xf32> -> vector<64x128xf32>
    %139 = vector.shape_cast %138 : vector<64x128xf32> to vector<4x16x128xf32>
    %140 = vector.extract_strided_slice %139 {offsets = [0, 0, 0], sizes = [4, 8, 128], strides = [1, 1, 1]} : vector<4x16x128xf32> to vector<4x8x128xf32>
    %141 = vector.extract_strided_slice %139 {offsets = [0, 8, 0], sizes = [4, 8, 128], strides = [1, 1, 1]} : vector<4x16x128xf32> to vector<4x8x128xf32>
    %142 = arith.maximumf %140, %141 : vector<4x8x128xf32>
    %143 = vector.shape_cast %142 : vector<4x8x128xf32> to vector<32x128xf32>
    %144 = vector.extract_strided_slice %143 {offsets = [0, 0], sizes = [8, 128], strides = [1, 1]} : vector<32x128xf32> to vector<8x128xf32>
    %145 = vector.extract_strided_slice %143 {offsets = [8, 0], sizes = [8, 128], strides = [1, 1]} : vector<32x128xf32> to vector<8x128xf32>
    %146 = vector.extract_strided_slice %143 {offsets = [16, 0], sizes = [8, 128], strides = [1, 1]} : vector<32x128xf32> to vector<8x128xf32>
    %147 = vector.extract_strided_slice %143 {offsets = [24, 0], sizes = [8, 128], strides = [1, 1]} : vector<32x128xf32> to vector<8x128xf32>
    %148 = tpu.concatenate %144, %145, %146, %147 in 1 : vector<8x128xf32>, vector<8x128xf32>, vector<8x128xf32>, vector<8x128xf32> -> vector<8x512xf32>
    %149 = arith.truncf %148 : vector<8x512xf32> to vector<8x512xbf16>
    %c0_57 = arith.constant 0 : index
    %c0_58 = arith.constant 0 : index
    %150 = vector.load %arg7[%c0_57, %c0_58] : memref<512x256xbf16, #tpu.memory_space<vmem>>, vector<512x256xbf16>
    %cst_59 = arith.constant dense<0.000000e+00> : vector<8x256xf32>
    %151 = tpu.matmul %149, %150, %cst_59 {dimension_numbers = #tpu.dot_dimension_numbers<[1], [0], [0], [1], [0, 0, 1, 1], [], []>} : vector<8x512xbf16>, vector<512x256xbf16>, vector<8x256xf32> -> vector<8x256xf32>
    %c0_60 = arith.constant 0 : index
    %c0_61 = arith.constant 0 : index
    %152 = vector.load %arg8[%c0_60, %c0_61] : memref<1x256xf32, #tpu.memory_space<vmem>>, vector<1x256xf32>
    %153 = vector.broadcast %152 : vector<1x256xf32> to vector<8x256xf32>
    %154 = arith.addf %151, %153 : vector<8x256xf32>
    %c0_62 = arith.constant 0 : index
    %c0_63 = arith.constant 0 : index
    %155 = vector.load %arg9[%c0_62, %c0_63] : memref<32x256xf32, #tpu.memory_space<vmem>>, vector<32x256xf32>
    %cst_64 = arith.constant 0.000000e+00 : f32
    %156 = vector.broadcast %cst_64 : f32 to vector<8x32xf32>
    %cst_65 = arith.constant 0.000000e+00 : f32
    %157 = vector.broadcast %cst_65 : f32 to vector<8x32xf32>
    %cst_66 = arith.constant dense<0.000000e+00> : vector<8x256xf32>
    %158 = tpu.matmul %156, %155, %cst_66 {dimension_numbers = #tpu.dot_dimension_numbers<[1], [0], [0], [1], [0, 0, 1, 1], [], []>} : vector<8x32xf32>, vector<32x256xf32>, vector<8x256xf32> -> vector<8x256xf32>
    %159 = vector.extract_strided_slice %154 {offsets = [0, 0], sizes = [4, 128], strides = [1, 1]} : vector<8x256xf32> to vector<4x128xf32>
    %160 = vector.extract_strided_slice %158 {offsets = [0, 0], sizes = [4, 128], strides = [1, 1]} : vector<8x256xf32> to vector<4x128xf32>
    %161 = arith.addf %159, %160 : vector<4x128xf32>
    %162 = vector.extract_strided_slice %154 {offsets = [4, 128], sizes = [4, 128], strides = [1, 1]} : vector<8x256xf32> to vector<4x128xf32>
    %163 = vector.extract_strided_slice %158 {offsets = [4, 128], sizes = [4, 128], strides = [1, 1]} : vector<8x256xf32> to vector<4x128xf32>
    %164 = arith.addf %162, %163 : vector<4x128xf32>
    %165 = tpu.concatenate %161, %164 in 0 : vector<4x128xf32>, vector<4x128xf32> -> vector<8x128xf32>
    %166 = vector.extract_strided_slice %165 {offsets = [0, 0], sizes = [8, 32], strides = [1, 1]} : vector<8x128xf32> to vector<8x32xf32>
    %167 = arith.negf %166 : vector<8x32xf32>
    %168 = math.exp %167 : vector<8x32xf32>
    %cst_67 = arith.constant 1.000000e+00 : f32
    %169 = vector.broadcast %cst_67 : f32 to vector<8x32xf32>
    %170 = arith.addf %169, %168 : vector<8x32xf32>
    %171 = arith.divf %169, %170 : vector<8x32xf32>
    %172 = vector.extract_strided_slice %165 {offsets = [0, 32], sizes = [8, 32], strides = [1, 1]} : vector<8x128xf32> to vector<8x32xf32>
    %173 = arith.negf %172 : vector<8x32xf32>
    %174 = math.exp %173 : vector<8x32xf32>
    %cst_68 = arith.constant 1.000000e+00 : f32
    %175 = vector.broadcast %cst_68 : f32 to vector<8x32xf32>
    %176 = arith.addf %175, %174 : vector<8x32xf32>
    %177 = arith.divf %175, %176 : vector<8x32xf32>
    %178 = vector.extract_strided_slice %165 {offsets = [0, 64], sizes = [8, 32], strides = [1, 1]} : vector<8x128xf32> to vector<8x32xf32>
    %179 = math.tanh %178 : vector<8x32xf32>
    %180 = vector.extract_strided_slice %165 {offsets = [0, 96], sizes = [8, 32], strides = [1, 1]} : vector<8x128xf32> to vector<8x32xf32>
    %181 = arith.negf %180 : vector<8x32xf32>
    %182 = math.exp %181 : vector<8x32xf32>
    %cst_69 = arith.constant 1.000000e+00 : f32
    %183 = vector.broadcast %cst_69 : f32 to vector<8x32xf32>
    %184 = arith.addf %183, %182 : vector<8x32xf32>
    %185 = arith.divf %183, %184 : vector<8x32xf32>
    %186 = arith.mulf %177, %157 : vector<8x32xf32>
    %187 = arith.mulf %171, %179 : vector<8x32xf32>
    %188 = arith.addf %186, %187 : vector<8x32xf32>
    %189 = math.tanh %188 : vector<8x32xf32>
    %190 = arith.mulf %185, %189 : vector<8x32xf32>
    %191 = vector.extract_strided_slice %190 {offsets = [0, 0], sizes = [4, 32], strides = [1, 1]} : vector<8x32xf32> to vector<4x32xf32>
    %192 = vector.extract_strided_slice %190 {offsets = [4, 0], sizes = [4, 32], strides = [1, 1]} : vector<8x32xf32> to vector<4x32xf32>
    %cst_70 = arith.constant dense<0.000000e+00> : vector<8x256xf32>
    %193 = tpu.matmul %190, %155, %cst_70 {dimension_numbers = #tpu.dot_dimension_numbers<[1], [0], [0], [1], [0, 0, 1, 1], [], []>} : vector<8x32xf32>, vector<32x256xf32>, vector<8x256xf32> -> vector<8x256xf32>
    %194 = vector.extract_strided_slice %154 {offsets = [4, 0], sizes = [4, 128], strides = [1, 1]} : vector<8x256xf32> to vector<4x128xf32>
    %195 = vector.extract_strided_slice %193 {offsets = [0, 0], sizes = [4, 128], strides = [1, 1]} : vector<8x256xf32> to vector<4x128xf32>
    %196 = arith.addf %194, %195 : vector<4x128xf32>
    %197 = vector.extract_strided_slice %154 {offsets = [0, 128], sizes = [4, 128], strides = [1, 1]} : vector<8x256xf32> to vector<4x128xf32>
    %198 = vector.extract_strided_slice %193 {offsets = [4, 128], sizes = [4, 128], strides = [1, 1]} : vector<8x256xf32> to vector<4x128xf32>
    %199 = arith.addf %197, %198 : vector<4x128xf32>
    %200 = tpu.concatenate %196, %199 in 0 : vector<4x128xf32>, vector<4x128xf32> -> vector<8x128xf32>
    %201 = vector.extract_strided_slice %200 {offsets = [0, 0], sizes = [8, 32], strides = [1, 1]} : vector<8x128xf32> to vector<8x32xf32>
    %202 = arith.negf %201 : vector<8x32xf32>
    %203 = math.exp %202 : vector<8x32xf32>
    %cst_71 = arith.constant 1.000000e+00 : f32
    %204 = vector.broadcast %cst_71 : f32 to vector<8x32xf32>
    %205 = arith.addf %204, %203 : vector<8x32xf32>
    %206 = arith.divf %204, %205 : vector<8x32xf32>
    %207 = vector.extract_strided_slice %200 {offsets = [0, 32], sizes = [8, 32], strides = [1, 1]} : vector<8x128xf32> to vector<8x32xf32>
    %208 = arith.negf %207 : vector<8x32xf32>
    %209 = math.exp %208 : vector<8x32xf32>
    %cst_72 = arith.constant 1.000000e+00 : f32
    %210 = vector.broadcast %cst_72 : f32 to vector<8x32xf32>
    %211 = arith.addf %210, %209 : vector<8x32xf32>
    %212 = arith.divf %210, %211 : vector<8x32xf32>
    %213 = vector.extract_strided_slice %200 {offsets = [0, 64], sizes = [8, 32], strides = [1, 1]} : vector<8x128xf32> to vector<8x32xf32>
    %214 = math.tanh %213 : vector<8x32xf32>
    %215 = vector.extract_strided_slice %200 {offsets = [0, 96], sizes = [8, 32], strides = [1, 1]} : vector<8x128xf32> to vector<8x32xf32>
    %216 = arith.negf %215 : vector<8x32xf32>
    %217 = math.exp %216 : vector<8x32xf32>
    %cst_73 = arith.constant 1.000000e+00 : f32
    %218 = vector.broadcast %cst_73 : f32 to vector<8x32xf32>
    %219 = arith.addf %218, %217 : vector<8x32xf32>
    %220 = arith.divf %218, %219 : vector<8x32xf32>
    %221 = arith.mulf %212, %188 : vector<8x32xf32>
    %222 = arith.mulf %206, %214 : vector<8x32xf32>
    %223 = arith.addf %221, %222 : vector<8x32xf32>
    %224 = math.tanh %223 : vector<8x32xf32>
    %225 = arith.mulf %220, %224 : vector<8x32xf32>
    %226 = vector.extract_strided_slice %225 {offsets = [0, 0], sizes = [4, 32], strides = [1, 1]} : vector<8x32xf32> to vector<4x32xf32>
    %227 = vector.extract_strided_slice %225 {offsets = [4, 0], sizes = [4, 32], strides = [1, 1]} : vector<8x32xf32> to vector<4x32xf32>
    %228 = tpu.concatenate %191, %226 in 0 : vector<4x32xf32>, vector<4x32xf32> -> vector<8x32xf32>
    %229 = tpu.concatenate %227, %192 in 0 : vector<4x32xf32>, vector<4x32xf32> -> vector<8x32xf32>
    %230 = tpu.concatenate %228, %229 in 1 : vector<8x32xf32>, vector<8x32xf32> -> vector<8x64xf32>
    %231 = arith.truncf %230 : vector<8x64xf32> to vector<8x64xbf16>
    %c0_74 = arith.constant 0 : index
    %c0_75 = arith.constant 0 : index
    %232 = vector.load %arg10[%c0_74, %c0_75] : memref<64x256xbf16, #tpu.memory_space<vmem>>, vector<64x256xbf16>
    %cst_76 = arith.constant dense<0.000000e+00> : vector<8x256xf32>
    %233 = tpu.matmul %231, %232, %cst_76 {dimension_numbers = #tpu.dot_dimension_numbers<[1], [0], [0], [1], [0, 0, 1, 1], [], []>} : vector<8x64xbf16>, vector<64x256xbf16>, vector<8x256xf32> -> vector<8x256xf32>
    %c0_77 = arith.constant 0 : index
    %c0_78 = arith.constant 0 : index
    %234 = vector.load %arg11[%c0_77, %c0_78] : memref<1x256xf32, #tpu.memory_space<vmem>>, vector<1x256xf32>
    %235 = vector.broadcast %234 : vector<1x256xf32> to vector<8x256xf32>
    %236 = arith.addf %233, %235 : vector<8x256xf32>
    %c0_79 = arith.constant 0 : index
    %c0_80 = arith.constant 0 : index
    %237 = vector.load %arg12[%c0_79, %c0_80] : memref<32x256xf32, #tpu.memory_space<vmem>>, vector<32x256xf32>
    %cst_81 = arith.constant 0.000000e+00 : f32
    %238 = vector.broadcast %cst_81 : f32 to vector<8x32xf32>
    %cst_82 = arith.constant 0.000000e+00 : f32
    %239 = vector.broadcast %cst_82 : f32 to vector<8x32xf32>
    %cst_83 = arith.constant dense<0.000000e+00> : vector<8x256xf32>
    %240 = tpu.matmul %238, %237, %cst_83 {dimension_numbers = #tpu.dot_dimension_numbers<[1], [0], [0], [1], [0, 0, 1, 1], [], []>} : vector<8x32xf32>, vector<32x256xf32>, vector<8x256xf32> -> vector<8x256xf32>
    %241 = vector.extract_strided_slice %236 {offsets = [0, 0], sizes = [4, 128], strides = [1, 1]} : vector<8x256xf32> to vector<4x128xf32>
    %242 = vector.extract_strided_slice %240 {offsets = [0, 0], sizes = [4, 128], strides = [1, 1]} : vector<8x256xf32> to vector<4x128xf32>
    %243 = arith.addf %241, %242 : vector<4x128xf32>
    %244 = vector.extract_strided_slice %236 {offsets = [4, 128], sizes = [4, 128], strides = [1, 1]} : vector<8x256xf32> to vector<4x128xf32>
    %245 = vector.extract_strided_slice %240 {offsets = [4, 128], sizes = [4, 128], strides = [1, 1]} : vector<8x256xf32> to vector<4x128xf32>
    %246 = arith.addf %244, %245 : vector<4x128xf32>
    %247 = tpu.concatenate %243, %246 in 0 : vector<4x128xf32>, vector<4x128xf32> -> vector<8x128xf32>
    %248 = vector.extract_strided_slice %247 {offsets = [0, 0], sizes = [8, 32], strides = [1, 1]} : vector<8x128xf32> to vector<8x32xf32>
    %249 = arith.negf %248 : vector<8x32xf32>
    %250 = math.exp %249 : vector<8x32xf32>
    %cst_84 = arith.constant 1.000000e+00 : f32
    %251 = vector.broadcast %cst_84 : f32 to vector<8x32xf32>
    %252 = arith.addf %251, %250 : vector<8x32xf32>
    %253 = arith.divf %251, %252 : vector<8x32xf32>
    %254 = vector.extract_strided_slice %247 {offsets = [0, 32], sizes = [8, 32], strides = [1, 1]} : vector<8x128xf32> to vector<8x32xf32>
    %255 = arith.negf %254 : vector<8x32xf32>
    %256 = math.exp %255 : vector<8x32xf32>
    %cst_85 = arith.constant 1.000000e+00 : f32
    %257 = vector.broadcast %cst_85 : f32 to vector<8x32xf32>
    %258 = arith.addf %257, %256 : vector<8x32xf32>
    %259 = arith.divf %257, %258 : vector<8x32xf32>
    %260 = vector.extract_strided_slice %247 {offsets = [0, 64], sizes = [8, 32], strides = [1, 1]} : vector<8x128xf32> to vector<8x32xf32>
    %261 = math.tanh %260 : vector<8x32xf32>
    %262 = vector.extract_strided_slice %247 {offsets = [0, 96], sizes = [8, 32], strides = [1, 1]} : vector<8x128xf32> to vector<8x32xf32>
    %263 = arith.negf %262 : vector<8x32xf32>
    %264 = math.exp %263 : vector<8x32xf32>
    %cst_86 = arith.constant 1.000000e+00 : f32
    %265 = vector.broadcast %cst_86 : f32 to vector<8x32xf32>
    %266 = arith.addf %265, %264 : vector<8x32xf32>
    %267 = arith.divf %265, %266 : vector<8x32xf32>
    %268 = arith.mulf %259, %239 : vector<8x32xf32>
    %269 = arith.mulf %253, %261 : vector<8x32xf32>
    %270 = arith.addf %268, %269 : vector<8x32xf32>
    %271 = math.tanh %270 : vector<8x32xf32>
    %272 = arith.mulf %267, %271 : vector<8x32xf32>
    %273 = vector.extract_strided_slice %272 {offsets = [0, 0], sizes = [4, 32], strides = [1, 1]} : vector<8x32xf32> to vector<4x32xf32>
    %274 = vector.extract_strided_slice %272 {offsets = [4, 0], sizes = [4, 32], strides = [1, 1]} : vector<8x32xf32> to vector<4x32xf32>
    %cst_87 = arith.constant dense<0.000000e+00> : vector<8x256xf32>
    %275 = tpu.matmul %272, %237, %cst_87 {dimension_numbers = #tpu.dot_dimension_numbers<[1], [0], [0], [1], [0, 0, 1, 1], [], []>} : vector<8x32xf32>, vector<32x256xf32>, vector<8x256xf32> -> vector<8x256xf32>
    %276 = vector.extract_strided_slice %236 {offsets = [4, 0], sizes = [4, 128], strides = [1, 1]} : vector<8x256xf32> to vector<4x128xf32>
    %277 = vector.extract_strided_slice %275 {offsets = [0, 0], sizes = [4, 128], strides = [1, 1]} : vector<8x256xf32> to vector<4x128xf32>
    %278 = arith.addf %276, %277 : vector<4x128xf32>
    %279 = vector.extract_strided_slice %236 {offsets = [0, 128], sizes = [4, 128], strides = [1, 1]} : vector<8x256xf32> to vector<4x128xf32>
    %280 = vector.extract_strided_slice %275 {offsets = [4, 128], sizes = [4, 128], strides = [1, 1]} : vector<8x256xf32> to vector<4x128xf32>
    %281 = arith.addf %279, %280 : vector<4x128xf32>
    %282 = tpu.concatenate %278, %281 in 0 : vector<4x128xf32>, vector<4x128xf32> -> vector<8x128xf32>
    %283 = vector.extract_strided_slice %282 {offsets = [0, 0], sizes = [8, 32], strides = [1, 1]} : vector<8x128xf32> to vector<8x32xf32>
    %284 = arith.negf %283 : vector<8x32xf32>
    %285 = math.exp %284 : vector<8x32xf32>
    %cst_88 = arith.constant 1.000000e+00 : f32
    %286 = vector.broadcast %cst_88 : f32 to vector<8x32xf32>
    %287 = arith.addf %286, %285 : vector<8x32xf32>
    %288 = arith.divf %286, %287 : vector<8x32xf32>
    %289 = vector.extract_strided_slice %282 {offsets = [0, 32], sizes = [8, 32], strides = [1, 1]} : vector<8x128xf32> to vector<8x32xf32>
    %290 = arith.negf %289 : vector<8x32xf32>
    %291 = math.exp %290 : vector<8x32xf32>
    %cst_89 = arith.constant 1.000000e+00 : f32
    %292 = vector.broadcast %cst_89 : f32 to vector<8x32xf32>
    %293 = arith.addf %292, %291 : vector<8x32xf32>
    %294 = arith.divf %292, %293 : vector<8x32xf32>
    %295 = vector.extract_strided_slice %282 {offsets = [0, 64], sizes = [8, 32], strides = [1, 1]} : vector<8x128xf32> to vector<8x32xf32>
    %296 = math.tanh %295 : vector<8x32xf32>
    %297 = vector.extract_strided_slice %282 {offsets = [0, 96], sizes = [8, 32], strides = [1, 1]} : vector<8x128xf32> to vector<8x32xf32>
    %298 = arith.negf %297 : vector<8x32xf32>
    %299 = math.exp %298 : vector<8x32xf32>
    %cst_90 = arith.constant 1.000000e+00 : f32
    %300 = vector.broadcast %cst_90 : f32 to vector<8x32xf32>
    %301 = arith.addf %300, %299 : vector<8x32xf32>
    %302 = arith.divf %300, %301 : vector<8x32xf32>
    %303 = arith.mulf %294, %270 : vector<8x32xf32>
    %304 = arith.mulf %288, %296 : vector<8x32xf32>
    %305 = arith.addf %303, %304 : vector<8x32xf32>
    %306 = math.tanh %305 : vector<8x32xf32>
    %307 = arith.mulf %302, %306 : vector<8x32xf32>
    %308 = vector.extract_strided_slice %307 {offsets = [0, 0], sizes = [4, 32], strides = [1, 1]} : vector<8x32xf32> to vector<4x32xf32>
    %309 = vector.extract_strided_slice %307 {offsets = [4, 0], sizes = [4, 32], strides = [1, 1]} : vector<8x32xf32> to vector<4x32xf32>
    %310 = tpu.concatenate %273, %308 in 0 : vector<4x32xf32>, vector<4x32xf32> -> vector<8x32xf32>
    %311 = tpu.concatenate %309, %274 in 0 : vector<4x32xf32>, vector<4x32xf32> -> vector<8x32xf32>
    %312 = arith.addf %310, %311 : vector<8x32xf32>
    %c0_91 = arith.constant 0 : index
    %c0_92 = arith.constant 0 : index
    %313 = vector.load %arg13[%c0_91, %c0_92] : memref<8x32xf32, #tpu.memory_space<vmem>>, vector<8x32xf32>
    tpu.vector_store %arg13[%c0_91, %c0_92], %312 {strides = array<i32>} : memref<8x32xf32, #tpu.memory_space<vmem>>, vector<8x32xf32>,
    return
  }
}

</mosaic_0001>

<bundles_post_ra>
// kernel: _lambda_.1
= control target key start
LH: loop header
LB: loop body
LE: loop exit
PB: predicated region body
PF: predicated region fallthrough
CT: control target
= control target key end

     0   :  { %18 = vsyncpa [#allocation3], 0  ;;  %s3800_s0 = inlined_call_operand.vmem [shape: f32[8,64], index: 0, kind: input, shape index: {}]   ;;  %s3801_s1 = inlined_call_operand.vmem [shape: f32[8,32], index: 1, kind: input, shape index: {}]   ;;  %s3802_s2 = inlined_call_operand.vmem [shape: f32[1,32], index: 2, kind: input, shape index: {}]   ;;  %s3803_s3 = inlined_call_operand.vmem [shape: bf16[256,64], index: 3, kind: input, shape index: {}]   ;;  %s3804_s4 = inlined_call_operand.vmem [shape: f32[1,64], index: 4, kind: input, shape index: {}]   ;;  %s3805_s5 = inlined_call_operand.hbm [shape: bf16[512,128], index: 5, kind: input, shape index: {}]   ;;  %s3806_s6 = inlined_call_operand.vmem [shape: f32[1,128], index: 6, kind: input, shape index: {}]   ;;  %s3807_s7 = inlined_call_operand.hbm [shape: bf16[512,256], index: 7, kind: input, shape index: {}]   ;;  %s3808_s8 = inlined_call_operand.vmem [shape: f32[1,256], index: 8, kind: input, shape index: {}]   ;;  %s3809_s9 = inlined_call_operand.vmem [shape: f32[32,256], index: 9, kind: input, shape index: {}]   ;;  %s3810_s10 = inlined_call_operand.vmem [shape: bf16[64,256], index: 10, kind: input, shape index: {}]   ;;  %s3811_s11 = inlined_call_operand.vmem [shape: f32[1,256], index: 11, kind: input, shape index: {}]   ;;  %s3812_s12 = inlined_call_operand.vmem [shape: f32[32,256], index: 12, kind: input, shape index: {}]   ;;  %s3813_s13 = inlined_call_operand.vmem [shape: f32[8,32], index: 13, kind: output, shape index: {}]  }
   0x1   :  { %s34_s27 = sshll.u32 %s3805_s5, 4  ;;  %s35_s27 = int_to_ptr.hbm [resolvable:$true] %s34_s27 }
   0x2   :  { %19 = vsyncpa [#allocation5], 0  ;;  %s3158_s28 = smov [#allocation2]   ;;  %s49_s15 = sshll.u32 %s3807_s7, 4  ;;  %s50_s15 = int_to_ptr.hbm [resolvable:$true] %s49_s15 }
   0x3   :  { %s36_s29 = sshll.u32 %s3158_s28, 4  ;;  %s3159_s16 = smov 64   ;;  %s37_s29 = int_to_ptr.vmem [resolvable:$true] %s36_s29 }
   0x4   :  { %s3160_s17 = smov 4   ;;  %s3161_s18 = smov [#allocation4]  }
   0x5   :  { %42 = dma.hbm_to_vmem [thread:$0]  %s35_s27, 4096, %s37_s29, [#allocation3], %s3159_s16, %s3159_s16, %s3160_s17  }
   0x6   :  { %s51_s19 = sshll.u32 %s3161_s18, 4  ;;  %s3162_s20 = smov 128   ;;  %s52_s19 = int_to_ptr.vmem [resolvable:$true] %s51_s19 }
   0x7   :  { %s3163_s5 = smov 8  }
   0x8   :  { %57 = dma.hbm_to_vmem [thread:$0]  %s50_s15, 8192, %s52_s19, [#allocation5], %s3162_s20, %s3162_s20, %s3163_s5  }
   0x9   :  { %3154 = dma.done.wait [#allocation3], 4096  }
   0xa   :  { %3155 = vsyncadd [#allocation3], 4294963200 }
   0xb   :  { %3156 = dma.done.wait [#allocation5], 8192  }
   0xc   :  { %3157 = vsyncadd [#allocation5], 4294959104  ;;  %v77_v0 = vld [vmem:[%s3800_s0] sm:$0xff]  ;;  %vm82_vm0 = vcmask 31744   ;;  %vm84_vm1 = vcmask 556032   ;;  %vm124_vm2 = vcmask 64512  }
   0xd   :  { %79 = vrot.lane.b32.xlu0 %v77_v0, %s3160_s17  ;;  %v119_v1 = vld [vmem:[%s3801_s1] sm:$0xff]  ;;  %s3164_s24 = smov 112   ;;  %s3165_s25 = smov 120   ;;  %v2928_v5 = vld [vmem:[%s3803_s3 + $0x8] sm:$0xff]  ;;  %v2930_v7 = vld [vmem:[%s3803_s3 + $0x18] sm:$0xff]  ;;  %v3179_v8 = vmov 0.0|0.0  }
   0xe   :  { %174 = vmatpush.msra.mxu0 %v119_v1  ;;  %s3166_s26 = smov 124   ;;  %s3167_s0 = smov 108   ;;  %358 = vmatpush.bf16.msra.mxu2 %v2928_v5  ;;  %v2927_v6 = vld [vmem:[%s3803_s3] sm:$0xff]  ;;  %v2929_v9 = vld [vmem:[%s3803_s3 + $0x10] sm:$0xff]  ;;  %vm281_vm3 = vcmask 261120   ;;  %v3180_v18 = vmov 0.0  }
   0xf   :  { %s3168_s27 = smov 116   ;;  %s3169_s1 = smov 104   ;;  %303 = vmatpush.bf16.msra.mxu1 %v2930_v7  ;;  %v3287_v12 = vld [vmem:[%s3802_s2] ss:$0 sm:$0xff]  ;;  %v2932_v28 = vld [vmem:[%s3803_s3 + $0x28] sm:$0xff]  ;;  %v2934_v39 = vld [vmem:[%s3803_s3 + $0x38] sm:$0xff] }
  0x10   :  { %s3170_s28 = smov 96   ;;  %s3171_s29 = smov 100   ;;  %412 = vmatpush.bf16.msra.mxu3 %v2932_v28  ;;  %v2931_v30 = vld [vmem:[%s3803_s3 + $0x20] sm:$0xff]  ;;  %v2940_v43 = vld [vmem:[%s3803_s3 + $0x68] sm:$0xff]  ;;  %vm833_vm4 = vcmask 523264   ;;  %vm1930_vm5 = vcmask 1043456  }
  0x11   :  { %s3172_s30 = smov 92   ;;  %s3173_s14 = smov 84   ;;  %660 = vmatpush.bf16.msrb.mxu0 %v2940_v43  ;;  %v2939_v48 = vld [vmem:[%s3803_s3 + $0x60] sm:$0xff] }
  0x12   :  { %s3174_s15 = smov 88   ;;  %s3175_s17 = smov 80   ;;  %359 = vmatpush.bf16.msra.mxu2 %v2927_v6  ;;  %v2933_v6 = vld [vmem:[%s3803_s3 + $0x30] sm:$0xff] }
  0x13   :  { %s3176_s18 = smov 72   ;;  %s3177_s19 = smov 76   ;;  %304 = vmatpush.bf16.msra.mxu1 %v2929_v9 }
  0x14   :  { %s3178_s20 = smov 68   ;;  %413 = vmatpush.bf16.msra.mxu3 %v2931_v30 }
  0x15   :  { %360 = vmatmul.bf16.vlgmr.msra.gmra.mxu2 %v3179_v8  ;;  %661 = vmatpush.bf16.msrb.mxu0 %v2939_v48 }
  0x16   :  { %305 = vmatmul.bf16.vlgmr.msra.gmra.mxu1 %v3179_v8 }
  0x17   :  { %414 = vmatmul.bf16.vlgmr.msra.gmra.mxu3 %v3179_v8  ;;  %476 = vmatpush.bf16.msrb.mxu1 %v2934_v39  ;;  %v2937_v39 = vld [vmem:[%s3803_s3 + $0x50] sm:$0xff] }
  0x1b   :  { %477 = vmatpush.bf16.msrb.mxu1 %v2933_v6 }
  0x25   :  { %365 = vmatmul.bf16.gmra.mxu2 %v3179_v8 }
  0x7f   :  { %v80_v2 = vpop.permute.xlu0 %79 }
  0x80   :  { %v83_v3 = vsel %vm82_vm0, 0.0, %v80_v2 }
  0x81   :  { %v85_v4 = vsel %vm84_vm1, %v83_v3, 0.0 }
  0x82   :  { %93 = vrot.lane.b32.xlu2 %v85_v4, %s3164_s24  ;;  %89 = vrot.lane.b32.xlu1 %v85_v4, %s3165_s25 }
  0x83   :  { %87 = vrot.lane.b32.xlu0 %v85_v4, %s3166_s26  ;;  %2366 = vmatmul.msk.f32.vlgmr.msra.gmra.mxu0 %vm124_vm2, %v85_v4 }
  0x8a   :  { %95 = vrot.lane.b32.xlu2 %v85_v4, %s3167_s0  ;;  %91 = vrot.lane.b32.xlu1 %v85_v4, %s3168_s27 }
  0x8b   :  { %97 = vrot.lane.b32.xlu0 %v85_v4, %s3169_s1 }
  0x92   :  { %101 = vrot.lane.b32.xlu2 %v85_v4, %s3170_s28  ;;  %99 = vrot.lane.b32.xlu1 %v85_v4, %s3171_s29 }
  0x93   :  { %103 = vrot.lane.b32.xlu0 %v85_v4, %s3172_s30  ;;  %v306_v32 = vpop.f32.mrf.mxu1 }
  0x98   :  { %v361_v33 = vpop.f32.mrf.mxu2 }
  0x99   :  { %v3314_v34 = vadd.f32 %v361_v33, %v306_v32 }
  0x9a   :  { %107 = vrot.lane.b32.xlu2 %v85_v4, %s3173_s14  ;;  %105 = vrot.lane.b32.xlu1 %v85_v4, %s3174_s15  ;;  %v415_v43 = vpop.f32.mrf.mxu3 }
  0x9b   :  { %109 = vrot.lane.b32.xlu0 %v85_v4, %s3175_s17  ;;  %v3329_v45 = vpop.f32.mrf.mxu1 }
  0xa0   :  { %v3323_v41 = vpop.f32.mrf.mxu2 }
  0xa2   :  { %113 = vrot.lane.b32.xlu2 %v85_v4, %s3176_s18  ;;  %111 = vrot.lane.b32.xlu1 %v85_v4, %s3177_s19 }
  0xa3   :  { %115 = vrot.lane.b32.xlu0 %v85_v4, %s3178_s20 }
  0xa8   :  { %v366_v52 = vpop.f32.mrf.mxu2 }
  0xaa   :  { %117 = vrot.lane.b32.xlu1 %v85_v4, %s3159_s16 }
  0xdc   :  { %v94_v20 = vpop.permute.xlu2 %93 }
  0xe4   :  { %v96_v21 = vpop.permute.xlu2 %95 }
  0xec   :  { %v102_v24 = vpop.permute.xlu2 %101 }
  0xf4   :  { %v90_v11 = vpop.permute.xlu1 %89  ;;  %v108_v27 = vpop.permute.xlu2 %107 }
  0xf5   :  { %v88_v10 = vpop.permute.xlu0 %87 }
  0xf6   :  { %2367 = vmatmul.msk.f32.gmra.mxu0 %vm124_vm2, %v88_v10 }
  0xfc   :  { %v92_v16 = vpop.permute.xlu1 %91  ;;  %v114_v35 = vpop.permute.xlu2 %113 }
  0xfd   :  { %v98_v22 = vpop.permute.xlu0 %97 }
  0xfe   :  { %2368 = vmatmul.msk.f32.gmra.mxu0 %vm124_vm2, %v90_v11 }
 0x100   :  { %v176_v13 = vpop.f32.mrf.mxu0 }
 0x101   :  { %v177_v14 = vadd.f32 %v3287_v12, %v176_v13  ;;  %v2936_v13 = vld [vmem:[%s3803_s3 + $0x48] sm:$0xff] }
 0x102   :  { %540 = vmatpush.bf16.msrb.mxu2 %v2936_v13 }
 0x103   :  { %v227_v15 = vmax.f32 %v177_v14, 0.0 }
 0x104   :  { %v100_v23 = vpop.permute.xlu1 %99 }
 0x105   :  { %v244_v17 = vmax.f32 %v227_v15, 0.0  ;;  %v104_v25 = vpop.permute.xlu0 %103 }
 0x106   :  { %2369 = vmatmul.msk.f32.gmra.mxu0 %vm124_vm2, %v92_v16 }
 0x107   :  { %v3293_v19 = vpack.c.bf16 %v244_v17, %v3180_v18 }
 0x109   :  { %2391 = vmatmul.msk.bf16.gmra.mxu1 %vm281_vm3, %v3293_v19 }
 0x10c   :  { %v106_v26 = vpop.permute.xlu1 %105 }
 0x10d   :  { %v110_v29 = vpop.permute.xlu0 %109 }
 0x10e   :  { %2370 = vmatmul.msk.f32.gmra.mxu0 %vm124_vm2, %v94_v20 }
 0x114   :  { %v112_v31 = vpop.permute.xlu1 %111 }
 0x115   :  { %v116_v36 = vpop.permute.xlu0 %115 }
 0x116   :  { %2371 = vmatmul.msk.f32.gmra.mxu0 %vm124_vm2, %v96_v21 }
 0x11c   :  { %v118_v37 = vpop.permute.xlu1 %117 }
 0x11e   :  { %2372 = vmatmul.msk.f32.gmra.mxu0 %vm124_vm2, %v98_v22  ;;  %v2938_v22 = vld [vmem:[%s3803_s3 + $0x58] sm:$0xff] }
 0x11f   :  { %600 = vmatpush.bf16.msrb.mxu3 %v2938_v22  ;;  %v2950_v22 = vld [vmem:[#allocation2 + $0x38] sm:$0xff] }
 0x123   :  { %601 = vmatpush.bf16.msrb.mxu3 %v2937_v39  ;;  %v2945_v39 = vld [vmem:[#allocation2 + $0x10] sm:$0xff] }
 0x126   :  { %2373 = vmatmul.msk.f32.gmra.mxu0 %vm124_vm2, %v100_v23 }
 0x12e   :  { %2374 = vmatmul.msk.f32.gmra.mxu0 %vm124_vm2, %v102_v24 }
 0x136   :  { %2375 = vmatmul.msk.f32.gmra.mxu0 %vm124_vm2, %v104_v25 }
 0x13e   :  { %2376 = vmatmul.msk.f32.gmra.mxu0 %vm124_vm2, %v106_v26 }
 0x146   :  { %2377 = vmatmul.msk.f32.gmra.mxu0 %vm124_vm2, %v108_v27 }
 0x14e   :  { %2378 = vmatmul.msk.f32.gmra.mxu0 %vm124_vm2, %v110_v29 }
 0x156   :  { %2379 = vmatmul.msk.f32.gmra.mxu0 %vm124_vm2, %v112_v31  ;;  %v2942_v31 = vld [vmem:[%s3803_s3 + $0x78] sm:$0xff] }
 0x157   :  { %720 = vmatpush.bf16.msra.mxu1 %v2942_v31 }
 0x15e   :  { %2380 = vmatmul.msk.f32.gmra.mxu0 %vm124_vm2, %v114_v35 }
 0x166   :  { %2381 = vmatmul.msk.f32.gmra.mxu0 %vm124_vm2, %v116_v36 }
 0x16e   :  { %2382 = vmatmul.msk.f32.gmra.mxu0 %vm124_vm2, %v118_v37 }
 0x173   :  { %v179_v38 = vpop.f32.mrf.mxu0 }
 0x174   :  { %v180_v40 = vadd.f32 %v3287_v12, %v179_v38 }
 0x176   :  { %v228_v46 = vmax.f32 %v180_v40, 0.0 }
 0x17b   :  { %v182_v42 = vpop.f32.mrf.mxu0 }
 0x17c   :  { %v183_v44 = vadd.f32 %v3287_v12, %v182_v42 }
 0x17e   :  { %v229_v47 = vmax.f32 %v183_v44, 0.0  ;;  %v3388_v44 = vadd.f32 %v415_v43, %v3314_v34  ;;  %v2941_v34 = vld [vmem:[%s3803_s3 + $0x70] sm:$0xff]  ;;  %v2944_v43 = vld [vmem:[#allocation2 + $0x8] sm:$0xff] }
 0x17f   :  { %721 = vmatpush.bf16.msra.mxu1 %v2941_v34  ;;  %v2952_v34 = vld [vmem:[#allocation2 + $0x48] sm:$0xff] }
 0x180   :  { %v245_v49 = vmax.f32 %v228_v46, %v229_v47 }
 0x182   :  { %v3334_v50 = vpack.c.bf16 %v245_v49, %v244_v17  ;;  %v2935_v17 = vld [vmem:[%s3803_s3 + $0x40] sm:$0xff] }
 0x183   :  { %v185_v51 = vpop.f32.mrf.mxu0  ;;  %541 = vmatpush.bf16.msrb.mxu2 %v2935_v17 }
 0x184   :  { %2403 = vmatmul.msk.bf16.gmra.mxu2 %vm281_vm3, %v3334_v50  ;;  %2414 = vmatmul.msk.bf16.gmra.mxu3 %vm281_vm3, %v3334_v50  ;;  %v186_v55 = vadd.f32 %v3287_v12, %v185_v51 }
 0x186   :  { %v311_v53 = vpop.f32.mrf.mxu1  ;;  %v230_v58 = vmax.f32 %v186_v55, 0.0 }
 0x187   :  { %v3340_v54 = vadd.f32 %v366_v52, %v311_v53  ;;  %849 = vmatpush.bf16.msra.mxu2 %v2950_v22 }
 0x18b   :  { %v188_v56 = vpop.f32.mrf.mxu0 }
 0x18c   :  { %v189_v57 = vadd.f32 %v3287_v12, %v188_v56 }
 0x18e   :  { %v231_v59 = vmax.f32 %v189_v57, 0.0 }
 0x190   :  { %v246_v60 = vmax.f32 %v230_v58, %v231_v59 }
 0x192   :  { %v3344_v61 = vpack.c.bf16 %v246_v60, %v245_v49 }
 0x193   :  { %v191_v62 = vpop.f32.mrf.mxu0 }
 0x194   :  { %2392 = vmatmul.msk.bf16.gmra.mxu1 %vm281_vm3, %v3344_v61  ;;  %v192_v63 = vadd.f32 %v3287_v12, %v191_v62 }
 0x196   :  { %v232_v2 = vmax.f32 %v192_v63, 0.0 }
 0x19b   :  { %v194_v0 = vpop.f32.mrf.mxu0 }
 0x19c   :  { %v195_v1 = vadd.f32 %v3287_v12, %v194_v0  ;;  %v3419_v0 = vpop.f32.mrf.mxu2 }
 0x19e   :  { %v233_v3 = vmax.f32 %v195_v1, 0.0 }
 0x1a0   :  { %v247_v4 = vmax.f32 %v232_v2, %v233_v3 }
 0x1a2   :  { %v255_v5 = vpack.c.bf16 %v247_v4, %v246_v60 }
 0x1a3   :  { %v197_v7 = vpop.f32.mrf.mxu0 }
 0x1a4   :  { %2404 = vmatmul.msk.bf16.gmra.mxu2 %vm281_vm3, %v255_v5  ;;  %2415 = vmatmul.msk.bf16.gmra.mxu3 %vm281_vm3, %v255_v5  ;;  %v198_v9 = vadd.f32 %v3287_v12, %v197_v7 }
 0x1a5   :  { %2464 = vmatmul.msk.bf16.vlgmr.msrb.gmra.mxu0 %vm281_vm3, %v255_v5 }
 0x1a6   :  { %v234_v14 = vmax.f32 %v198_v9, 0.0 }
 0x1ab   :  { %v200_v10 = vpop.f32.mrf.mxu0 }
 0x1ac   :  { %v201_v11 = vadd.f32 %v3287_v12, %v200_v10 }
 0x1ae   :  { %v235_v15 = vmax.f32 %v201_v11, 0.0 }
 0x1b0   :  { %v248_v16 = vmax.f32 %v234_v14, %v235_v15 }
 0x1b2   :  { %v3364_v20 = vpack.c.bf16 %v248_v16, %v247_v4 }
 0x1b3   :  { %v203_v21 = vpop.f32.mrf.mxu0 }
 0x1b4   :  { %2393 = vmatmul.msk.bf16.gmra.mxu1 %vm281_vm3, %v3364_v20  ;;  %v204_v23 = vadd.f32 %v3287_v12, %v203_v21 }
 0x1b6   :  { %v236_v26 = vmax.f32 %v204_v23, 0.0 }
 0x1bb   :  { %v206_v24 = vpop.f32.mrf.mxu0 }
 0x1bc   :  { %v207_v25 = vadd.f32 %v3287_v12, %v206_v24 }
 0x1be   :  { %v237_v27 = vmax.f32 %v207_v25, 0.0 }
 0x1c0   :  { %v249_v28 = vmax.f32 %v236_v26, %v237_v27  ;;  %v2949_v27 = vld [vmem:[#allocation2 + $0x30] sm:$0xff] }
 0x1c1   :  { %850 = vmatpush.bf16.msra.mxu2 %v2949_v27 }
 0x1c2   :  { %v256_v29 = vpack.c.bf16 %v249_v28, %v248_v16 }
 0x1c3   :  { %v209_v30 = vpop.f32.mrf.mxu0 }
 0x1c4   :  { %2405 = vmatmul.msk.bf16.gmra.mxu2 %vm281_vm3, %v256_v29  ;;  %2416 = vmatmul.msk.bf16.gmra.mxu3 %vm281_vm3, %v256_v29  ;;  %v210_v32 = vadd.f32 %v3287_v12, %v209_v30 }
 0x1c5   :  { %2465 = vmatmul.msk.bf16.gmra.mxu0 %vm281_vm3, %v256_v29 }
 0x1c6   :  { %v238_v36 = vmax.f32 %v210_v32, 0.0 }
 0x1cb   :  { %v212_v33 = vpop.f32.mrf.mxu0 }
 0x1cc   :  { %v213_v35 = vadd.f32 %v3287_v12, %v212_v33 }
 0x1ce   :  { %v239_v37 = vmax.f32 %v213_v35, 0.0 }
 0x1d0   :  { %v250_v38 = vmax.f32 %v238_v36, %v239_v37  ;;  %v2948_v36 = vld [vmem:[#allocation2 + $0x28] sm:$0xff] }
 0x1d1   :  { %851 = vmatpush.bf16.msra.mxu2 %v2948_v36 }
 0x1d2   :  { %v264_v40 = vpack.c.bf16 %v250_v38, %v249_v28 }
 0x1d3   :  { %v215_v42 = vpop.f32.mrf.mxu0 }
 0x1d4   :  { %2394 = vmatmul.msk.bf16.gmra.mxu1 %vm281_vm3, %v264_v40  ;;  %2439 = vmatmul.msk.bf16.vlgmr.msrb.gmra.mxu2 %vm281_vm3, %v3334_v50  ;;  %v216_v46 = vadd.f32 %v3287_v12, %v215_v42 }
 0x1d6   :  { %v240_v49 = vmax.f32 %v216_v46, 0.0  ;;  %v2943_v46 = vld [vmem:[#allocation2] sm:$0xff] }
 0x1db   :  { %v218_v47 = vpop.f32.mrf.mxu0 }
 0x1dc   :  { %v219_v48 = vadd.f32 %v3287_v12, %v218_v47 }
 0x1de   :  { %v241_v51 = vmax.f32 %v219_v48, 0.0  ;;  %v2954_v48 = vld [vmem:[#allocation2 + $0x58] sm:$0xff] }
 0x1df   :  { %975 = vmatpush.bf16.msra.mxu0 %v2954_v48  ;;  %v2962_v48 = vld [vmem:[#allocation2 + $0x98] sm:$0xff] }
 0x1e0   :  { %v251_v52 = vmax.f32 %v240_v49, %v241_v51 }
 0x1e2   :  { %v386_v53 = vpack.c.bf16 %v251_v52, %v250_v38  ;;  %v2946_v38 = vld [vmem:[#allocation2 + $0x18] sm:$0xff] }
 0x1e3   :  { %v221_v55 = vpop.f32.mrf.mxu0  ;;  %907 = vmatpush.bf16.msra.mxu3 %v2946_v38 }
 0x1e4   :  { %2417 = vmatmul.msk.bf16.gmra.mxu3 %vm281_vm3, %v386_v53  ;;  %2426 = vmatmul.msk.bf16.vlgmr.msrb.gmra.mxu1 %vm281_vm3, %v3293_v19  ;;  %v222_v50 = vadd.f32 %v3287_v12, %v221_v55  ;;  %v3408_v19 = vpop.f32.mrf.mxu3 }
 0x1e5   :  { %2440 = vmatmul.msk.bf16.gmra.mxu2 %vm281_vm3, %v255_v5  ;;  %2466 = vmatmul.msk.bf16.gmra.mxu0 %vm281_vm3, %v386_v53 }
 0x1e6   :  { %v242_v58 = vmax.f32 %v222_v50, 0.0 }
 0x1e7   :  { %908 = vmatpush.bf16.msra.mxu3 %v2945_v39  ;;  %v2963_v39 = vld [vmem:[#allocation2 + $0xa0] sm:$0xff] }
 0x1eb   :  { %v224_v56 = vpop.f32.mrf.mxu0  ;;  %909 = vmatpush.bf16.msra.mxu3 %v2944_v43 }
 0x1ec   :  { %v225_v57 = vadd.f32 %v3287_v12, %v224_v56 }
 0x1ee   :  { %v243_v59 = vmax.f32 %v225_v57, 0.0  ;;  %v2951_v57 = vld [vmem:[#allocation2 + $0x40] sm:$0xff] }
 0x1ef   :  { %910 = vmatpush.bf16.msra.mxu3 %v2943_v46 }
 0x1f0   :  { %v252_v60 = vmax.f32 %v242_v58, %v243_v59  ;;  %v2958_v59 = vld [vmem:[#allocation2 + $0x78] sm:$0xff] }
 0x1f2   :  { %v514_v62 = vpack.c.bf16 0.0, %v252_v60  ;;  %v450_v5 = vpack.c.bf16 %v252_v60, %v251_v52  ;;  %v2953_v52 = vld [vmem:[#allocation2 + $0x50] sm:$0xff] }
 0x1f3   :  { %976 = vmatpush.bf16.msra.mxu0 %v2953_v52 }
 0x1f4   :  { %2427 = vmatmul.msk.bf16.gmra.mxu1 %vm281_vm3, %v3344_v61  ;;  %2452 = vmatmul.msk.bf16.vlgmr.msrb.gmra.mxu3 %vm281_vm3, %v3344_v61  ;;  %v3417_v61 = vpop.f32.mrf.mxu1 }
 0x1f5   :  { %2441 = vmatmul.msk.bf16.gmra.mxu2 %vm281_vm3, %v256_v29  ;;  %2467 = vmatmul.msk.bf16.gmra.mxu0 %vm281_vm3, %v514_v62  ;;  %v369_v52 = vadd.f32 %v3419_v0, %v3417_v61  ;;  %v2960_v0 = vld [vmem:[#allocation2 + $0x88] sm:$0xff] }
 0x1f6   :  { %1121 = vmatpush.bf16.msrb.mxu3 %v2962_v48 }
 0x1f7   :  { %977 = vmatpush.bf16.msra.mxu0 %v2952_v34 }
 0x1fb   :  { %978 = vmatpush.bf16.msra.mxu0 %v2951_v57 }
 0x204   :  { %2428 = vmatmul.msk.bf16.gmra.mxu1 %vm281_vm3, %v3364_v20  ;;  %2453 = vmatmul.msk.bf16.gmra.mxu3 %vm281_vm3, %v3364_v20 }
 0x205   :  { %2442 = vmatmul.msk.bf16.gmra.mxu2 %vm281_vm3, %v386_v53  ;;  %682 = vmatmul.bf16.gmra.mxu0 %v3179_v8 }
 0x207   :  { %v420_v12 = vpop.f32.mrf.mxu3  ;;  %v371_v1 = vpop.f32.mrf.mxu2 }
 0x208   :  { %v442_v63 = vadd.f32 %v420_v12, %v3340_v54 }
 0x20f   :  { %v3424_v4 = vpop.f32.mrf.mxu3  ;;  %v3428_v7 = vpop.f32.mrf.mxu2 }
 0x211   :  { %v316_v2 = vpop.f32.mrf.mxu1 }
 0x212   :  { %v372_v3 = vadd.f32 %v371_v1, %v316_v2 }
 0x214   :  { %2429 = vmatmul.msk.bf16.gmra.mxu1 %vm281_vm3, %v264_v40  ;;  %2454 = vmatmul.msk.bf16.gmra.mxu3 %vm281_vm3, %v264_v40 }
 0x215   :  { %2443 = vmatmul.msk.bf16.gmra.mxu2 %vm281_vm3, %v514_v62  ;;  %979 = vmatmul.bf16.vlgmr.msra.gmra.mxu0 %v3179_v8 }
 0x219   :  { %v3430_v9 = vpop.f32.mrf.mxu1 }
 0x222   :  { %v663_v60 = vpop.f32.mrf.mxu0 }
 0x224   :  { %2430 = vmatmul.msk.bf16.gmra.mxu1 %vm281_vm3, %v450_v5  ;;  %2455 = vmatmul.msk.bf16.gmra.mxu3 %vm281_vm3, %v450_v5 }
 0x227   :  { %v425_v54 = vpop.f32.mrf.mxu3  ;;  %v376_v10 = vpop.f32.mrf.mxu2 }
 0x228   :  { %v444_v6 = vadd.f32 %v425_v54, %v372_v3  ;;  %v364_v54 = vadd.f32 %v3323_v41, %v3329_v45 }
 0x22f   :  { %v3435_v14 = vpop.f32.mrf.mxu3  ;;  %v3438_v17 = vpop.f32.mrf.mxu2 }
 0x231   :  { %v321_v11 = vpop.f32.mrf.mxu1 }
 0x232   :  { %v377_v13 = vadd.f32 %v376_v10, %v321_v11 }
 0x234   :  { %622 = vmatmul.bf16.gmra.mxu3 %v3179_v8  ;;  %2476 = vmatmul.msk.bf16.vlgmr.msra.gmra.mxu1 %vm281_vm3, %v3364_v20 }
 0x239   :  { %v3440_v21 = vpop.f32.mrf.mxu1 }
 0x244   :  { %2477 = vmatmul.msk.bf16.gmra.mxu1 %vm281_vm3, %v264_v40  ;;  %911 = vmatmul.bf16.vlgmr.msra.gmra.mxu3 %v3179_v8 }
 0x247   :  { %v430_v15 = vpop.f32.mrf.mxu3  ;;  %v381_v23 = vpop.f32.mrf.mxu2 }
 0x248   :  { %v446_v16 = vadd.f32 %v430_v15, %v377_v13  ;;  %v2966_v13 = vld [vmem:[#allocation2 + $0xb8] sm:$0xff]  ;;  %v2957_v15 = vld [vmem:[#allocation2 + $0x70] sm:$0xff] }
 0x249   :  { %1192 = vmatpush.bf16.msrb.mxu1 %v2966_v13  ;;  %v2959_v13 = vld [vmem:[#allocation2 + $0x80] sm:$0xff] }
 0x24f   :  { %v3445_v20 = vpop.f32.mrf.mxu3  ;;  %v3460_v49 = vpop.f32.mrf.mxu2 }
 0x251   :  { %v326_v24 = vpop.f32.mrf.mxu1 }
 0x252   :  { %v382_v25 = vadd.f32 %v381_v23, %v326_v24  ;;  %v3480_v23 = vld [vmem:[%s3804_s4] ss:$0 sm:$0xff]  ;;  %v2965_v24 = vld [vmem:[#allocation2 + $0xb0] sm:$0xff] }
 0x253   :  { %1193 = vmatpush.bf16.msrb.mxu1 %v2965_v24 }
 0x254   :  { %2478 = vmatmul.msk.bf16.gmra.mxu1 %vm281_vm3, %v450_v5  ;;  %916 = vmatmul.bf16.gmra.mxu3 %v3179_v8  ;;  %v665_v5 = vpop.f32.mrf.mxu0 }
 0x257   :  { %v543_v50 = vpop.f32.mrf.mxu2 }
 0x259   :  { %v3443_v26 = vpop.f32.mrf.mxu1 }
 0x25c   :  { %v668_v41 = vpop.f32.mrf.mxu0 }
 0x25f   :  { %v545_v12 = vpop.f32.mrf.mxu2 }
 0x261   :  { %v479_v28 = vpop.f32.mrf.mxu1 }
 0x262   :  { %v504_v29 = vadd.f32 %v479_v28, %v3388_v44  ;;  %v2947_v44 = vld [vmem:[#allocation2 + $0x20] sm:$0xff] }
 0x263   :  { %852 = vmatpush.bf16.msra.mxu2 %v2947_v44 }
 0x264   :  { %737 = vmatmul.bf16.gmra.mxu1 %v3179_v8  ;;  %v568_v3 = vadd.f32 %v543_v50, %v504_v29  ;;  %v2964_v29 = vld [vmem:[#allocation2 + $0xa8] sm:$0xff] }
 0x265   :  { %1194 = vmatpush.bf16.msrb.mxu1 %v2964_v29  ;;  %v2956_v50 = vld [vmem:[#allocation2 + $0x68] sm:$0xff] }
 0x266   :  { %853 = vmatmul.bf16.vlgmr.msra.gmra.mxu2 %v3179_v8 }
 0x267   :  { %v435_v30 = vpop.f32.mrf.mxu3  ;;  %1050 = vmatpush.bf16.msrb.mxu2 %v2958_v59 }
 0x268   :  { %v448_v31 = vadd.f32 %v435_v30, %v382_v25 }
 0x269   :  { %v481_v32 = vpop.f32.mrf.mxu1  ;;  %1195 = vmatpush.bf16.msrb.mxu1 %v2963_v39 }
 0x26b   :  { %1051 = vmatpush.bf16.msrb.mxu2 %v2957_v15 }
 0x26f   :  { %v3462_v51 = vpop.f32.mrf.mxu3  ;;  %1052 = vmatpush.bf16.msrb.mxu2 %v2956_v50 }
 0x271   :  { %v484_v33 = vpop.f32.mrf.mxu1 }
 0x272   :  { %v3449_v35 = vadd.f32 %v484_v33, %v442_v63 }
 0x274   :  { %742 = vmatmul.bf16.gmra.mxu1 %v3179_v8 }
 0x277   :  { %v603_v56 = vpop.f32.mrf.mxu3 }
 0x278   :  { %v628_v10 = vadd.f32 %v603_v56, %v568_v3  ;;  %v443_v56 = vadd.f32 %v3424_v4, %v369_v52 }
 0x279   :  { %v3452_v37 = vpop.f32.mrf.mxu1 }
 0x27a   :  { %v688_v22 = vadd.f32 %v663_v60, %v628_v10  ;;  %v2961_v60 = vld [vmem:[#allocation2 + $0x90] sm:$0xff] }
 0x27b   :  { %1122 = vmatpush.bf16.msrb.mxu3 %v2961_v60 }
 0x27f   :  { %v605_v63 = vpop.f32.mrf.mxu3  ;;  %1123 = vmatpush.bf16.msrb.mxu3 %v2960_v0 }
 0x281   :  { %v489_v40 = vpop.f32.mrf.mxu1 }
 0x282   :  { %v3454_v42 = vadd.f32 %v489_v40, %v444_v6  ;;  %v548_v6 = vpop.f32.mrf.mxu2 }
 0x283   :  { %v570_v43 = vadd.f32 %v548_v6, %v3449_v35  ;;  %1124 = vmatpush.bf16.msrb.mxu3 %v2959_v13 }
 0x287   :  { %v608_v11 = vpop.f32.mrf.mxu3 }
 0x288   :  { %v630_v44 = vadd.f32 %v608_v11, %v570_v43 }
 0x289   :  { %v3456_v47 = vpop.f32.mrf.mxu1 }
 0x28a   :  { %v550_v30 = vpop.f32.mrf.mxu2  ;;  %v690_v59 = vadd.f32 %v668_v41, %v630_v44 }
 0x28f   :  { %v610_v33 = vpop.f32.mrf.mxu3 }
 0x291   :  { %v494_v53 = vpop.f32.mrf.mxu1 }
 0x292   :  { %v3464_v55 = vadd.f32 %v494_v53, %v446_v16  ;;  %v441_v16 = vadd.f32 %v3408_v19, %v364_v54  ;;  %v670_v53 = vpop.f32.mrf.mxu0  ;;  %v553_v35 = vpop.f32.mrf.mxu2 }
 0x294   :  { %v505_v27 = vadd.f32 %v481_v32, %v441_v16 }
 0x297   :  { %v613_v57 = vpop.f32.mrf.mxu3 }
 0x299   :  { %v3466_v58 = vpop.f32.mrf.mxu1 }
 0x29a   :  { %v555_v16 = vpop.f32.mrf.mxu2 }
 0x2a1   :  { %v499_v62 = vpop.f32.mrf.mxu1 }
 0x2a2   :  { %v3470_v1 = vadd.f32 %v499_v62, %v448_v31  ;;  %v569_v31 = vadd.f32 %v545_v12, %v505_v27  ;;  %v507_v12 = vadd.f32 %v3452_v37, %v443_v56  ;;  %v615_v37 = vpop.f32.mrf.mxu3  ;;  %v2970_v56 = vld [vmem:[#allocation2 + $0xd8] sm:$0xff] }
 0x2a3   :  { %1259 = vmatpush.bf16.msrb.mxu0 %v2970_v56 }
 0x2a4   :  { %v629_v36 = vadd.f32 %v605_v63, %v569_v31  ;;  %v571_v54 = vadd.f32 %v550_v30, %v507_v12  ;;  %v2974_v12 = vld [vmem:[#allocation2 + $0xf8] sm:$0xff] }
 0x2a6   :  { %v689_v46 = vadd.f32 %v665_v5, %v629_v36  ;;  %v673_v5 = vpop.f32.mrf.mxu0  ;;  %v631_v4 = vadd.f32 %v610_v33, %v571_v54  ;;  %v2968_v54 = vld [vmem:[#allocation2 + $0xc8] sm:$0xff] }
 0x2a8   :  { %v691_v27 = vadd.f32 %v670_v53, %v631_v4 }
 0x2a9   :  { %v3472_v2 = vpop.f32.mrf.mxu1 }
 0x2aa   :  { %v618_v39 = vpop.f32.mrf.mxu3 }
 0x2b1   :  { %v723_v25 = vpop.f32.mrf.mxu1 }
 0x2b2   :  { %v748_v28 = vadd.f32 %v723_v25, %v688_v22  ;;  %v572_v22 = vadd.f32 %v553_v35, %v3454_v42  ;;  %v675_v42 = vpop.f32.mrf.mxu0  ;;  %v379_v35 = vadd.f32 %v3438_v17, %v3440_v21 }
 0x2b4   :  { %v762_v45 = vadd.f32 %v3480_v23, %v748_v28  ;;  %v632_v25 = vadd.f32 %v613_v57, %v572_v22  ;;  %v374_v28 = vadd.f32 %v3428_v7, %v3430_v9  ;;  %v447_v60 = vadd.f32 %v3445_v20, %v379_v35  ;;  %v2967_v20 = vld [vmem:[#allocation2 + $0xc0] sm:$0xff] }
 0x2b5   :  { %v2971_v35 = vld [vmem:[#allocation2 + $0xe0] sm:$0xff] }
 0x2b6   :  { %v772_v19 = vmax.f32 %v762_v45, 0.0  ;;  %v2955_v45 = vld [vmem:[#allocation2 + $0x60] sm:$0xff]  ;;  %v445_v29 = vadd.f32 %v3435_v14, %v374_v28  ;;  %v692_v30 = vadd.f32 %v673_v5, %v632_v25 }
 0x2b7   :  { %1053 = vmatpush.bf16.msrb.mxu2 %v2955_v45 }
 0x2b8   :  { %v782_v38 = vmax.f32 %v772_v19, 0.0  ;;  %v509_v33 = vadd.f32 %v3456_v47, %v445_v29 }
 0x2b9   :  { %v725_v40 = vpop.f32.mrf.mxu1 }
 0x2ba   :  { %v3485_v32 = vpack.c.bf16 %v782_v38, %v3180_v18  ;;  %v749_v34 = vadd.f32 %v725_v40, %v689_v46  ;;  %v573_v43 = vadd.f32 %v555_v16, %v509_v33  ;;  %v678_v14 = vpop.f32.mrf.mxu0 }
 0x2bb   :  { %1326 = vmatpush.bf16.msra.mxu2 %v2974_v12 }
 0x2bc   :  { %2495 = vmatmul.msk.bf16.gmra.mxu2 %vm833_vm4, %v3485_v32  ;;  %v763_v63 = vadd.f32 %v3480_v23, %v749_v34  ;;  %v633_v9 = vadd.f32 %v615_v37, %v573_v43 }
 0x2be   :  { %v773_v6 = vmax.f32 %v763_v63, 0.0  ;;  %v693_v50 = vadd.f32 %v675_v42, %v633_v9  ;;  %v2969_v63 = vld [vmem:[#allocation2 + $0xd0] sm:$0xff] }
 0x2bf   :  { %1260 = vmatpush.bf16.msrb.mxu0 %v2969_v63  ;;  %v2973_v42 = vld [vmem:[#allocation2 + $0xf0] sm:$0xff] }
 0x2c0   :  { %1327 = vmatpush.bf16.msra.mxu2 %v2973_v42 }
 0x2c1   :  { %v728_v62 = vpop.f32.mrf.mxu1 }
 0x2c2   :  { %v750_v3 = vadd.f32 %v728_v62, %v690_v59  ;;  %v620_v59 = vpop.f32.mrf.mxu3 }
 0x2c3   :  { %1261 = vmatpush.bf16.msrb.mxu0 %v2968_v54 }
 0x2c4   :  { %v764_v61 = vadd.f32 %v3480_v23, %v750_v3 }
 0x2c6   :  { %v774_v10 = vmax.f32 %v764_v61, 0.0  ;;  %v511_v61 = vadd.f32 %v3466_v58, %v447_v60 }
 0x2c7   :  { %1262 = vmatpush.bf16.msrb.mxu0 %v2967_v20 }
 0x2c8   :  { %v783_v11 = vmax.f32 %v773_v6, %v774_v10  ;;  %v680_v6 = vpop.f32.mrf.mxu0 }
 0x2c9   :  { %v730_v15 = vpop.f32.mrf.mxu1 }
 0x2ca   :  { %v3496_v24 = vpack.c.bf16 %v783_v11, %v782_v38  ;;  %v751_v41 = vadd.f32 %v730_v15, %v691_v27  ;;  %v558_v38 = vpop.f32.mrf.mxu2  ;;  %v623_v15 = vpop.f32.mrf.mxu3  ;;  %v384_v27 = vadd.f32 %v3460_v49, %v3443_v26 }
 0x2cb   :  { %v574_v52 = vadd.f32 %v558_v38, %v3464_v55 }
 0x2cc   :  { %2514 = vmatmul.msk.bf16.gmra.mxu3 %vm833_vm4, %v3496_v24  ;;  %2532 = vmatmul.msk.bf16.gmra.mxu0 %vm833_vm4, %v3496_v24  ;;  %v765_v19 = vadd.f32 %v3480_v23, %v751_v41  ;;  %v449_v29 = vadd.f32 %v3462_v51, %v384_v27 }
 0x2cd   :  { %v634_v47 = vadd.f32 %v618_v39, %v574_v52 }
 0x2ce   :  { %v775_v44 = vmax.f32 %v765_v19, 0.0 }
 0x2cf   :  { %v694_v62 = vadd.f32 %v678_v14, %v634_v47  ;;  %v2972_v14 = vld [vmem:[#allocation2 + $0xe8] sm:$0xff] }
 0x2d0   :  { %v683_v41 = vpop.f32.mrf.mxu0  ;;  %1328 = vmatpush.bf16.msra.mxu2 %v2972_v14 }
 0x2d1   :  { %v733_v31 = vpop.f32.mrf.mxu1 }
 0x2d2   :  { %v752_v36 = vadd.f32 %v733_v31, %v692_v30  ;;  %v560_v57 = vpop.f32.mrf.mxu2  ;;  %v513_v30 = vadd.f32 %v3472_v2, %v449_v29  ;;  %v625_v49 = vpop.f32.mrf.mxu3 }
 0x2d3   :  { %v575_v21 = vadd.f32 %v560_v57, %v511_v61 }
 0x2d4   :  { %v766_v40 = vadd.f32 %v3480_v23, %v752_v36  ;;  %1329 = vmatpush.bf16.msra.mxu2 %v2971_v35 }
 0x2d5   :  { %v635_v13 = vadd.f32 %v620_v59, %v575_v21 }
 0x2d6   :  { %v776_v7 = vmax.f32 %v766_v40, 0.0 }
 0x2d7   :  { %v695_v45 = vadd.f32 %v680_v6, %v635_v13 }
 0x2d8   :  { %v784_v46 = vmax.f32 %v775_v44, %v776_v7  ;;  %v685_v51 = vpop.f32.mrf.mxu0 }
 0x2d9   :  { %v735_v48 = vpop.f32.mrf.mxu1 }
 0x2da   :  { %v3509_v53 = vpack.c.bf16 %v784_v46, %v783_v11  ;;  %v789_v34 = vpack.c.bf16 %v784_v46, %v784_v46  ;;  %v753_v55 = vadd.f32 %v735_v48, %v693_v50  ;;  %v563_v11 = vpop.f32.mrf.mxu2  ;;  %v912_v57 = vpop.f32.mrf.mxu3 }
 0x2db   :  { %v576_v58 = vadd.f32 %v563_v11, %v3470_v1 }
 0x2dc   :  { %2496 = vmatmul.msk.bf16.gmra.mxu2 %vm833_vm4, %v3509_v53  ;;  %2515 = vmatmul.msk.bf16.gmra.mxu3 %vm833_vm4, %v789_v34  ;;  %v767_v0 = vadd.f32 %v3480_v23, %v753_v55 }
 0x2dd   :  { %2590 = vmatmul.msk.bf16.vlgmr.msrb.gmra.mxu1 %vm833_vm4, %v3509_v53  ;;  %v636_v28 = vadd.f32 %v623_v15, %v576_v58 }
 0x2de   :  { %v777_v10 = vmax.f32 %v767_v0, 0.0 }
 0x2df   :  { %v696_v31 = vadd.f32 %v683_v41, %v636_v28 }
 0x2e0   :  { %v980_v55 = vpop.f32.mrf.mxu0 }
 0x2e1   :  { %v738_v3 = vpop.f32.mrf.mxu1 }
 0x2e2   :  { %v754_v5 = vadd.f32 %v738_v3, %v694_v62  ;;  %v565_v26 = vpop.f32.mrf.mxu2  ;;  %v914_v60 = vpop.f32.mrf.mxu3 }
 0x2e3   :  { %v577_v38 = vadd.f32 %v565_v26, %v513_v30 }
 0x2e4   :  { %v768_v17 = vadd.f32 %v3480_v23, %v754_v5 }
 0x2e5   :  { %v637_v40 = vadd.f32 %v625_v49, %v577_v38 }
 0x2e6   :  { %v778_v4 = vmax.f32 %v768_v17, 0.0 }
 0x2e7   :  { %v697_v7 = vadd.f32 %v685_v51, %v637_v40  ;;  %v2990_v40 = vld [vmem:[#allocation4 + $0x74] sm:$0xf0] }
 0x2e8   :  { %v785_v16 = vmax.f32 %v777_v10, %v778_v4  ;;  %v982_v12 = vpop.f32.mrf.mxu0 }
 0x2e9   :  { %v740_v22 = vpop.f32.mrf.mxu1 }
 0x2ea   :  { %v800_v37 = vpack.c.bf16 %v785_v16, %v785_v16  ;;  %v931_v25 = vpack.c.bf16 %v785_v16, %v784_v46  ;;  %v755_v1 = vadd.f32 %v740_v22, %v695_v45  ;;  %v917_v61 = vpop.f32.mrf.mxu3 }
 0x2ec   :  { %2497 = vmatmul.msk.bf16.gmra.mxu2 %vm833_vm4, %v800_v37  ;;  %2533 = vmatmul.msk.bf16.gmra.mxu0 %vm833_vm4, %v931_v25  ;;  %v769_v19 = vadd.f32 %v3480_v23, %v755_v1 }
 0x2ed   :  { %2571 = vmatmul.msk.bf16.vlgmr.msrb.gmra.mxu3 %vm833_vm4, %v3496_v24 }
 0x2ee   :  { %v779_v43 = vmax.f32 %v769_v19, 0.0 }
 0x2f1   :  { %v743_v33 = vpop.f32.mrf.mxu1 }
 0x2f2   :  { %v756_v36 = vadd.f32 %v743_v33, %v696_v31  ;;  %v919_v5 = vpop.f32.mrf.mxu3 }
 0x2f4   :  { %v770_v39 = vadd.f32 %v3480_v23, %v756_v36 }
 0x2f6   :  { %v780_v44 = vmax.f32 %v770_v39, 0.0  ;;  %v2687_v39 = vld [vmem:[#allocation4 + $0x70] sm:$0xf] }
 0x2f8   :  { %v786_v24 = vmax.f32 %v779_v43, %v780_v44  ;;  %v2688_v44 = vor.u32 %v2990_v40, %v2687_v39  ;;  %v2978_v39 = vld [vmem:[#allocation4 + $0x14] sm:$0xf0]  ;;  %v2735_v40 = vld [vmem:[#allocation4 + $0xd0] sm:$0xf] }
 0x2f9   :  { %v745_v9 = vpop.f32.mrf.mxu1 }
 0x2fa   :  { %v932_v46 = vpack.c.bf16 %v786_v24, %v786_v24  ;;  %v1006_v2 = vpack.c.bf16 %v786_v24, %v785_v16  ;;  %v757_v48 = vadd.f32 %v745_v9, %v697_v7  ;;  %1773 = vmatpush.bf16.msra.mxu3 %v2688_v44  ;;  %v2679_v9 = vld [vmem:[#allocation4 + $0x60] sm:$0xf] }
 0x2fc   :  { %2534 = vmatmul.msk.bf16.gmra.mxu0 %vm833_vm4, %v932_v46  ;;  %2551 = vmatmul.msk.bf16.vlgmr.msrb.gmra.mxu2 %vm833_vm4, %v3485_v32  ;;  %v771_v52 = vadd.f32 %v3480_v23, %v757_v48  ;;  %v854_v32 = vpop.f32.mrf.mxu2  ;;  %v2988_v46 = vld [vmem:[#allocation4 + $0x64] sm:$0xf0] }
 0x2fd   :  { %2572 = vmatmul.msk.bf16.gmra.mxu3 %vm833_vm4, %v931_v25  ;;  %2591 = vmatmul.msk.bf16.gmra.mxu1 %vm833_vm4, %v1006_v2  ;;  %v913_v59 = vadd.f32 %v912_v57, %v854_v32  ;;  %v2989_v32 = vld [vmem:[#allocation4 + $0x74] sm:$0xf]  ;;  %v2689_v57 = vld [vmem:[#allocation4 + $0x78] sm:$0xf0] }
 0x2fe   :  { %v781_v34 = vmax.f32 %v771_v52, 0.0  ;;  %v2671_v52 = vld [vmem:[#allocation4 + $0x50] sm:$0xf] }
 0x2ff   :  { %v999_v23 = vadd.f32 %v980_v55, %v913_v59 }
 0x300   :  { %v787_v47 = vmax.f32 %v781_v34, 0.0  ;;  %v2986_v34 = vld [vmem:[#allocation4 + $0x54] sm:$0xf0] }
 0x302   :  { %v1081_v50 = vpack.c.bf16 %v787_v47, %v786_v24  ;;  %v1152_v56 = vpack.c.bf16 0.0, %v787_v47  ;;  %v1007_v3 = vpack.c.bf16 %v787_v47, %v787_v47 }
 0x30c   :  { %2552 = vmatmul.msk.bf16.gmra.mxu2 %vm833_vm4, %v3509_v53  ;;  %2609 = vmatmul.msk.bf16.vlgmr.msrb.gmra.mxu0 %vm833_vm4, %v931_v25  ;;  %v856_v53 = vpop.f32.mrf.mxu2 }
 0x30d   :  { %2573 = vmatmul.msk.bf16.gmra.mxu3 %vm833_vm4, %v1081_v50  ;;  %2592 = vmatmul.msk.bf16.gmra.mxu1 %vm833_vm4, %v1152_v56  ;;  %v915_v62 = vadd.f32 %v914_v60, %v856_v53  ;;  %v3006_v53 = vld [vmem:[#allocation4 + $0xf4] sm:$0xf0]  ;;  %v2692_v60 = vor.u32 %v2989_v32, %v2689_v57 }
 0x30f   :  { %v1000_v63 = vadd.f32 %v982_v12, %v915_v62  ;;  %v2663_v62 = vld [vmem:[#allocation4 + $0x40] sm:$0xf]  ;;  %1825 = vmatpush.bf16.msra.mxu0 %v2692_v60 }
 0x31c   :  { %2553 = vmatmul.msk.bf16.gmra.mxu2 %vm833_vm4, %v1006_v2  ;;  %2610 = vmatmul.msk.bf16.gmra.mxu0 %vm833_vm4, %v1081_v50 }
 0x31d   :  { %1140 = vmatmul.bf16.gmra.mxu3 %v3179_v8  ;;  %1211 = vmatmul.bf16.gmra.mxu1 %v3179_v8 }
 0x32c   :  { %2554 = vmatmul.msk.bf16.gmra.mxu2 %vm833_vm4, %v1007_v3  ;;  %1273 = vmatmul.bf16.gmra.mxu0 %v3179_v8  ;;  %v2984_v3 = vld [vmem:[#allocation4 + $0x44] sm:$0xf0] }
 0x33c   :  { %1278 = vmatmul.bf16.gmra.mxu0 %v3179_v8  ;;  %2627 = vmatmul.msk.bf16.vlgmr.msra.gmra.mxu2 %vm833_vm4, %v1006_v2  ;;  %v2680_v2 = vor.u32 %v2988_v46, %v2679_v9  ;;  %v2981_v9 = vld [vmem:[#allocation4 + $0x34] sm:$0xf]  ;;  %v2657_v46 = vld [vmem:[#allocation4 + $0x38] sm:$0xf0] }
 0x33e   :  { %1774 = vmatpush.bf16.msra.mxu3 %v2680_v2  ;;  %v3005_v2 = vld [vmem:[#allocation4 + $0xf4] sm:$0xf] }
 0x33f   :  { %v859_v0 = vpop.f32.mrf.mxu2 }
 0x340   :  { %v918_v54 = vadd.f32 %v917_v61, %v859_v0  ;;  %v2987_v0 = vld [vmem:[#allocation4 + $0x64] sm:$0xf] }
 0x347   :  { %v861_v21 = vpop.f32.mrf.mxu2 }
 0x348   :  { %v920_v4 = vadd.f32 %v919_v5, %v861_v21  ;;  %v2681_v5 = vld [vmem:[#allocation4 + $0x68] sm:$0xf0]  ;;  %v2655_v21 = vld [vmem:[#allocation4 + $0x30] sm:$0xf] }
 0x349   :  { %v985_v6 = vpop.f32.mrf.mxu0 }
 0x34a   :  { %v3552_v17 = vadd.f32 %v985_v6, %v918_v54  ;;  %v2684_v54 = vor.u32 %v2987_v0, %v2681_v5  ;;  %v3003_v0 = vld [vmem:[#allocation4 + $0xe4] sm:$0xf] }
 0x34c   :  { %2628 = vmatmul.msk.bf16.gmra.mxu2 %vm833_vm4, %v1152_v56  ;;  %v2672_v56 = vor.u32 %v2986_v34, %v2671_v52  ;;  %1826 = vmatpush.bf16.msra.mxu0 %v2684_v54  ;;  %v2660_v34 = vor.u32 %v2981_v9, %v2657_v46  ;;  %v2745_v54 = vld [vmem:[#allocation4 + $0xe8] sm:$0xf0] }
 0x34d   :  { %v2729_v46 = vld [vmem:[#allocation4 + $0xc8] sm:$0xf0] }
 0x34e   :  { %1775 = vmatpush.bf16.msra.mxu3 %v2672_v56  ;;  %v2631_v56 = vld [vmem:[#allocation4] sm:$0xf] }
 0x34f   :  { %v922_v10 = vpop.f32.mrf.mxu3 }
 0x351   :  { %v987_v20 = vpop.f32.mrf.mxu0 }
 0x352   :  { %v3555_v11 = vadd.f32 %v987_v20, %v920_v4 }
 0x357   :  { %v924_v13 = vpop.f32.mrf.mxu3 }
 0x35a   :  { %v1197_v37 = vpop.f32.mrf.mxu1 }
 0x35c   :  { %1340 = vmatmul.bf16.gmra.mxu2 %v3179_v8 }
 0x35f   :  { %v864_v15 = vpop.f32.mrf.mxu2  ;;  %v927_v16 = vpop.f32.mrf.mxu3 }
 0x360   :  { %v923_v25 = vadd.f32 %v922_v10, %v864_v15  ;;  %v2982_v10 = vld [vmem:[#allocation4 + $0x34] sm:$0xf0] }
 0x362   :  { %v1199_v30 = vpop.f32.mrf.mxu1 }
 0x367   :  { %v866_v22 = vpop.f32.mrf.mxu2  ;;  %v929_v58 = vpop.f32.mrf.mxu3 }
 0x368   :  { %v925_v27 = vadd.f32 %v924_v13, %v866_v22  ;;  %v2656_v13 = vor.u32 %v2982_v10, %v2655_v21  ;;  %v2673_v22 = vld [vmem:[#allocation4 + $0x58] sm:$0xf0]  ;;  %v2748_v21 = vor.u32 %v3003_v0, %v2745_v54  ;;  %v2719_v10 = vld [vmem:[#allocation4 + $0xb0] sm:$0xf]  ;;  %v3014_v54 = vld [vmem:[#allocation4 + $0x134] sm:$0xf0] }
 0x369   :  { %v990_v28 = vpop.f32.mrf.mxu0 }
 0x36a   :  { %v3558_v41 = vadd.f32 %v990_v28, %v923_v25  ;;  %v2743_v25 = vld [vmem:[#allocation4 + $0xe0] sm:$0xf] }
 0x36c   :  { %1345 = vmatmul.bf16.gmra.mxu2 %v3179_v8 }
 0x36f   :  { %v869_v45 = vpop.f32.mrf.mxu2 }
 0x370   :  { %v928_v29 = vadd.f32 %v927_v16, %v869_v45  ;;  %v1126_v42 = vpop.f32.mrf.mxu3  ;;  %v2985_v16 = vld [vmem:[#allocation4 + $0x54] sm:$0xf] }
 0x371   :  { %v992_v1 = vpop.f32.mrf.mxu0  ;;  %v2676_v28 = vor.u32 %v2985_v16, %v2673_v22  ;;  %v2807_v22 = vld [vmem:[#allocation4 + $0x160] sm:$0xf] }
 0x372   :  { %v3561_v31 = vadd.f32 %v992_v1, %v925_v27  ;;  %v3004_v27 = vld [vmem:[#allocation4 + $0xe4] sm:$0xf0] }
 0x373   :  { %v2744_v45 = vor.u32 %v3004_v27, %v2743_v25  ;;  %1827 = vmatpush.bf16.msra.mxu0 %v2676_v28  ;;  %v2977_v28 = vld [vmem:[#allocation4 + $0x14] sm:$0xf] }
 0x377   :  { %v871_v33 = vpop.f32.mrf.mxu2 }
 0x378   :  { %v1128_v26 = vpop.f32.mrf.mxu3  ;;  %v2665_v33 = vld [vmem:[#allocation4 + $0x48] sm:$0xf0] }
 0x379   :  { %v995_v49 = vpop.f32.mrf.mxu0 }
 0x37a   :  { %v3563_v19 = vadd.f32 %v995_v49, %v928_v29  ;;  %v1202_v36 = vpop.f32.mrf.mxu1  ;;  %v2647_v29 = vld [vmem:[#allocation4 + $0x20] sm:$0xf] }
 0x37f   :  { %v1055_v38 = vpop.f32.mrf.mxu2 }
 0x380   :  { %v1074_v51 = vadd.f32 %v1055_v38, %v999_v23  ;;  %v1131_v43 = vpop.f32.mrf.mxu3  ;;  %v2751_v23 = vld [vmem:[#allocation4 + $0xf0] sm:$0xf] }
 0x381   :  { %v997_v8 = vpop.f32.mrf.mxu0  ;;  %v2752_v12 = vor.u32 %v3006_v53, %v2751_v23  ;;  %v2639_v38 = vld [vmem:[#allocation4 + $0x10] sm:$0xf]  ;;  %v3000_v23 = vld [vmem:[#allocation4 + $0xc4] sm:$0xf0] }
 0x382   :  { %v1145_v24 = vadd.f32 %v1126_v42, %v1074_v51  ;;  %v3565_v7 = vpop.f32.mrf.mxu1  ;;  %v2980_v42 = vld [vmem:[#allocation4 + $0x24] sm:$0xf0]  ;;  %v2640_v44 = vor.u32 %v2978_v39, %v2639_v38  ;;  %v3002_v8 = vld [vmem:[#allocation4 + $0xd4] sm:$0xf0]  ;;  %v2815_v53 = vld [vmem:[#allocation4 + $0x170] sm:$0xf] }
 0x383   :  { %1786 = vmatpush.bf16.msra.mxu1 %v2752_v12  ;;  %v3022_v12 = vld [vmem:[#allocation4 + $0x174] sm:$0xf0] }
 0x384   :  { %v3567_v48 = vadd.f32 %v1197_v37, %v1145_v24  ;;  %v2736_v24 = vor.u32 %v3002_v8, %v2735_v40  ;;  %v2799_v40 = vld [vmem:[#allocation4 + $0x150] sm:$0xf]  ;;  %v2975_v8 = vld [vmem:[#allocation4 + $0x4] sm:$0xf] }
 0x387   :  { %v1057_v14 = vpop.f32.mrf.mxu2  ;;  %1787 = vmatpush.bf16.msra.mxu1 %v2744_v45  ;;  %v2641_v45 = vld [vmem:[#allocation4 + $0x18] sm:$0xf0] }
 0x388   :  { %v1075_v47 = vadd.f32 %v1057_v14, %v1000_v63  ;;  %v3569_v50 = vpop.f32.mrf.mxu3  ;;  %v2664_v63 = vor.u32 %v2984_v3, %v2663_v62  ;;  %v2979_v3 = vld [vmem:[#allocation4 + $0x24] sm:$0xf] }
 0x389   :  { %v3571_v35 = vpop.f32.mrf.mxu0 }
 0x38a   :  { %v1146_v59 = vadd.f32 %v1128_v26, %v1075_v47  ;;  %v3573_v55 = vpop.f32.mrf.mxu1  ;;  %1776 = vmatpush.bf16.msra.mxu3 %v2664_v63  ;;  %v2753_v47 = vld [vmem:[#allocation4 + $0xf8] sm:$0xf0]  ;;  %v2649_v63 = vld [vmem:[#allocation4 + $0x28] sm:$0xf0] }
 0x38b   :  { %1788 = vmatpush.bf16.msra.mxu1 %v2736_v24  ;;  %v2756_v32 = vor.u32 %v3005_v2, %v2753_v47  ;;  %v2652_v5 = vor.u32 %v2979_v3, %v2649_v63  ;;  %v2633_v24 = vld [vmem:[#allocation4 + $0x8] sm:$0xf0]  ;;  %v2994_v47 = vld [vmem:[#allocation4 + $0x94] sm:$0xf0]  ;;  %v2695_v3 = vld [vmem:[#allocation4 + $0x80] sm:$0xf] }
 0x38c   :  { %v3575_v61 = vadd.f32 %v1199_v30, %v1146_v59  ;;  %v2983_v30 = vld [vmem:[#allocation4 + $0x44] sm:$0xf]  ;;  %v2727_v59 = vld [vmem:[#allocation4 + $0xc0] sm:$0xf]  ;;  %v2636_v9 = vor.u32 %v2975_v8, %v2633_v24  ;;  %v2992_v63 = vld [vmem:[#allocation4 + $0x84] sm:$0xf0] }
 0x38d   :  { %v2668_v26 = vor.u32 %v2983_v30, %v2665_v33  ;;  %v2728_v62 = vor.u32 %v3000_v23, %v2727_v59  ;;  %1838 = vmatpush.bf16.msrb.mxu2 %v2756_v32  ;;  %v2737_v30 = vld [vmem:[#allocation4 + $0xd8] sm:$0xf0]  ;;  %v3016_v32 = vld [vmem:[#allocation4 + $0x144] sm:$0xf0]  ;;  %v2696_v0 = vor.u32 %v2992_v63, %v2695_v3  ;;  %v2991_v8 = vld [vmem:[#allocation4 + $0x84] sm:$0xf] }
 0x38e   :  { %1777 = vmatpush.bf16.msra.mxu3 %v2656_v13  ;;  %v2697_v24 = vld [vmem:[#allocation4 + $0x88] sm:$0xf0] }
 0x38f   :  { %v1060_v6 = vpop.f32.mrf.mxu2  ;;  %1828 = vmatpush.bf16.msra.mxu0 %v2668_v26  ;;  %1789 = vmatpush.bf16.msra.mxu1 %v2728_v62  ;;  %v2711_v26 = vld [vmem:[#allocation4 + $0xa0] sm:$0xf]  ;;  %v2721_v62 = vld [vmem:[#allocation4 + $0xb8] sm:$0xf0] }
 0x390   :  { %v1076_v4 = vadd.f32 %v1060_v6, %v3552_v17  ;;  %v3578_v20 = vpop.f32.mrf.mxu3  ;;  %v2648_v17 = vor.u32 %v2980_v42, %v2647_v29  ;;  %v3001_v29 = vld [vmem:[#allocation4 + $0xd4] sm:$0xf] }
 0x391   :  { %v3580_v15 = vpop.f32.mrf.mxu0  ;;  %1839 = vmatpush.bf16.msrb.mxu2 %v2748_v21 }
 0x392   :  { %v1147_v58 = vadd.f32 %v1131_v43, %v1076_v4  ;;  %v3582_v37 = vpop.f32.mrf.mxu1  ;;  %1778 = vmatpush.bf16.msra.mxu3 %v2648_v17  ;;  %v2998_v4 = vld [vmem:[#allocation4 + $0xb4] sm:$0xf0]  ;;  %v2644_v17 = vor.u32 %v2977_v28, %v2641_v45  ;;  %v2871_v28 = vld [vmem:[#allocation4 + $0x1e0] sm:$0xf] }
 0x393   :  { %1829 = vmatpush.bf16.msra.mxu0 %v2660_v34  ;;  %v2720_v16 = vor.u32 %v2998_v4, %v2719_v10  ;;  %v2703_v34 = vld [vmem:[#allocation4 + $0x90] sm:$0xf]  ;;  %v3038_v10 = vld [vmem:[#allocation4 + $0x1f4] sm:$0xf0]  ;;  %v2995_v4 = vld [vmem:[#allocation4 + $0xa4] sm:$0xf] }
 0x394   :  { %v3584_v1 = vadd.f32 %v1202_v36, %v1147_v58  ;;  %v3020_v58 = vld [vmem:[#allocation4 + $0x164] sm:$0xf0] }
 0x395   :  { %v2808_v27 = vor.u32 %v3020_v58, %v2807_v22  ;;  %1790 = vmatpush.bf16.msra.mxu1 %v2720_v16 }
 0x396   :  { %1779 = vmatpush.bf16.msra.mxu3 %v2640_v44 }
 0x397   :  { %v1062_v49 = vpop.f32.mrf.mxu2  ;;  %1830 = vmatpush.bf16.msra.mxu0 %v2652_v5  ;;  %v2783_v5 = vld [vmem:[#allocation4 + $0x130] sm:$0xf] }
 0x398   :  { %v1077_v51 = vadd.f32 %v1062_v49, %v3555_v11  ;;  %v3587_v43 = vpop.f32.mrf.mxu3  ;;  %v2976_v11 = vld [vmem:[#allocation4 + $0x4] sm:$0xf0]  ;;  %v2784_v21 = vor.u32 %v3014_v54, %v2783_v5  ;;  %v3021_v5 = vld [vmem:[#allocation4 + $0x174] sm:$0xf]  ;;  %v2817_v54 = vld [vmem:[#allocation4 + $0x178] sm:$0xf0] }
 0x399   :  { %v3589_v36 = vpop.f32.mrf.mxu0  ;;  %v2632_v57 = vor.u32 %v2976_v11, %v2631_v56  ;;  %v2996_v49 = vld [vmem:[#allocation4 + $0xa4] sm:$0xf0]  ;;  %v2704_v56 = vor.u32 %v2994_v47, %v2703_v34  ;;  %v2791_v11 = vld [vmem:[#allocation4 + $0x140] sm:$0xf] }
 0x39a   :  { %v1148_v14 = vadd.f32 %v3569_v50, %v1077_v51  ;;  %v3592_v52 = vpop.f32.mrf.mxu1  ;;  %v2816_v50 = vor.u32 %v3022_v12, %v2815_v53  ;;  %v2712_v39 = vor.u32 %v2996_v49, %v2711_v26  ;;  %v3018_v51 = vld [vmem:[#allocation4 + $0x154] sm:$0xf0]  ;;  %v2792_v23 = vor.u32 %v3016_v32, %v2791_v11  ;;  %v2997_v53 = vld [vmem:[#allocation4 + $0xb4] sm:$0xf]  ;;  %v3032_v47 = vld [vmem:[#allocation4 + $0x1c4] sm:$0xf0] }
 0x39b   :  { %1780 = vmatpush.bf16.msra.mxu3 %v2632_v57  ;;  %1831 = vmatpush.bf16.msra.mxu0 %v2644_v17  ;;  %v2800_v44 = vor.u32 %v3018_v51, %v2799_v40  ;;  %v2993_v17 = vld [vmem:[#allocation4 + $0x94] sm:$0xf]  ;;  %v2863_v40 = vld [vmem:[#allocation4 + $0x1d0] sm:$0xf]  ;;  %v3030_v11 = vld [vmem:[#allocation4 + $0x1b4] sm:$0xf0] }
 0x39c   :  { %v3595_v60 = vadd.f32 %v3565_v7, %v1148_v14  ;;  %1791 = vmatpush.bf16.msra.mxu1 %v2712_v39  ;;  %v3010_v39 = vld [vmem:[#allocation4 + $0x114] sm:$0xf0] }
 0x39f   :  { %v1065_v6 = vpop.f32.mrf.mxu2  ;;  %1799 = vmatpush.bf16.msrb.mxu3 %v2816_v50  ;;  %1832 = vmatpush.bf16.msra.mxu0 %v2636_v9  ;;  %v2724_v50 = vor.u32 %v2997_v53, %v2721_v62  ;;  %v2700_v9 = vor.u32 %v2991_v8, %v2697_v24  ;;  %v2785_v8 = vld [vmem:[#allocation4 + $0x138] sm:$0xf0] }
 0x3a0   :  { %v1078_v7 = vadd.f32 %v1065_v6, %v3558_v41  ;;  %v3598_v13 = vpop.f32.mrf.mxu3  ;;  %v2740_v41 = vor.u32 %v3001_v29, %v2737_v30  ;;  %1792 = vmatpush.bf16.msra.mxu1 %v2704_v56  ;;  %v2879_v6 = vld [vmem:[#allocation4 + $0x1f0] sm:$0xf]  ;;  %v2705_v30 = vld [vmem:[#allocation4 + $0x98] sm:$0xf0] }
 0x3a1   :  { %v3600_v25 = vpop.f32.mrf.mxu0  ;;  %v2880_v16 = vor.u32 %v3038_v10, %v2879_v6  ;;  %v2708_v26 = vor.u32 %v2993_v17, %v2705_v30  ;;  %v2847_v56 = vld [vmem:[#allocation4 + $0x1b0] sm:$0xf]  ;;  %v3017_v17 = vld [vmem:[#allocation4 + $0x154] sm:$0xf]  ;;  %v2801_v30 = vld [vmem:[#allocation4 + $0x158] sm:$0xf0] }
 0x3a2   :  { %v1149_v42 = vadd.f32 %v3578_v20, %v1078_v7  ;;  %v1214_v33 = vpop.f32.mrf.mxu1  ;;  %1840 = vmatpush.bf16.msrb.mxu2 %v2740_v41  ;;  %v2999_v20 = vld [vmem:[#allocation4 + $0xc4] sm:$0xf]  ;;  %v2713_v7 = vld [vmem:[#allocation4 + $0xa8] sm:$0xf0]  ;;  %v2848_v32 = vor.u32 %v3030_v11, %v2847_v56 }
 0x3a3   :  { %1800 = vmatpush.bf16.msrb.mxu3 %v2808_v27  ;;  %v2732_v14 = vor.u32 %v2999_v20, %v2729_v46  ;;  %v2716_v22 = vor.u32 %v2995_v4, %v2713_v7  ;;  %v2775_v27 = vld [vmem:[#allocation4 + $0x120] sm:$0xf]  ;;  %v2820_v7 = vor.u32 %v3021_v5, %v2817_v54  ;;  %v2777_v56 = vld [vmem:[#allocation4 + $0x128] sm:$0xf0]  ;;  %v3035_v11 = vld [vmem:[#allocation4 + $0x1e4] sm:$0xf] }
 0x3a4   :  { %v3604_v38 = vadd.f32 %v3573_v55, %v1149_v42  ;;  %1793 = vmatpush.bf16.msra.mxu1 %v2696_v0  ;;  %v3036_v42 = vld [vmem:[#allocation4 + $0x1e4] sm:$0xf0]  ;;  %v3033_v5 = vld [vmem:[#allocation4 + $0x1d4] sm:$0xf]  ;;  %v2865_v54 = vld [vmem:[#allocation4 + $0x1d8] sm:$0xf0] }
 0x3a5   :  { %v2872_v41 = vor.u32 %v3036_v42, %v2871_v28  ;;  %v1284_v28 = vadd.f32 %v3580_v15, %v3575_v61 }
 0x3a6   :  { %1841 = vmatpush.bf16.msrb.mxu2 %v2732_v14  ;;  %v2855_v14 = vld [vmem:[#allocation4 + $0x1c0] sm:$0xf] }
 0x3a7   :  { %v1067_v2 = vpop.f32.mrf.mxu2  ;;  %1801 = vmatpush.bf16.msrb.mxu3 %v2800_v44  ;;  %v3034_v44 = vld [vmem:[#allocation4 + $0x1d4] sm:$0xf0] }
 0x3a8   :  { %v1079_v55 = vadd.f32 %v1067_v2, %v3561_v31  ;;  %v1143_v57 = vpop.f32.mrf.mxu3  ;;  %1812 = vmatpush.bf16.msrb.mxu1 %v2880_v16  ;;  %v2864_v20 = vor.u32 %v3034_v44, %v2863_v40  ;;  %v3008_v2 = vld [vmem:[#allocation4 + $0x104] sm:$0xf0]  ;;  %v3019_v16 = vld [vmem:[#allocation4 + $0x164] sm:$0xf]  ;;  %v3013_v44 = vld [vmem:[#allocation4 + $0x134] sm:$0xf] }
 0x3a9   :  { %v3607_v59 = vpop.f32.mrf.mxu0  ;;  %v1283_v57 = vadd.f32 %v3571_v35, %v3567_v48  ;;  %v3026_v48 = vld [vmem:[#allocation4 + $0x194] sm:$0xf0]  ;;  %v3015_v40 = vld [vmem:[#allocation4 + $0x144] sm:$0xf] }
 0x3aa   :  { %v1150_v12 = vadd.f32 %v3587_v43, %v1079_v55  ;;  %1842 = vmatpush.bf16.msrb.mxu2 %v2724_v50  ;;  %v2856_v55 = vor.u32 %v3032_v47, %v2855_v14  ;;  %v3028_v50 = vld [vmem:[#allocation4 + $0x1a4] sm:$0xf0]  ;;  %v1881_v47 = vld [vmem:[%s3809_s9 + $0x20] sm:$0xff] }
 0x3ab   :  { %1802 = vmatpush.bf16.msrb.mxu3 %v2792_v23  ;;  %v3627_v23 = vld [vmem:[%s3806_s6] ss:$0 sm:$0xff] }
 0x3ac   :  { %v3611_v31 = vadd.f32 %v3582_v37, %v1150_v12  ;;  %v3012_v37 = vld [vmem:[#allocation4 + $0x124] sm:$0xf0]  ;;  %1813 = vmatpush.bf16.msrb.mxu1 %v2872_v41  ;;  %v2839_v12 = vld [vmem:[#allocation4 + $0x1a0] sm:$0xf] }
 0x3ad   :  { %v2776_v29 = vor.u32 %v3012_v37, %v2775_v27  ;;  %v2840_v3 = vor.u32 %v3028_v50, %v2839_v12  ;;  %v3024_v27 = vld [vmem:[#allocation4 + $0x184] sm:$0xf0]  ;;  %v3009_v50 = vld [vmem:[#allocation4 + $0x114] sm:$0xf] }
 0x3ae   :  { %1843 = vmatpush.bf16.msrb.mxu2 %v2716_v22 }
 0x3af   :  { %v1070_v43 = vpop.f32.mrf.mxu2  ;;  %1803 = vmatpush.bf16.msrb.mxu3 %v2784_v21  ;;  %v2831_v21 = vld [vmem:[#allocation4 + $0x190] sm:$0xf] }
 0x3b0   :  { %v1080_v58 = vadd.f32 %v1070_v43, %v3563_v19  ;;  %v2767_v19 = vld [vmem:[#allocation4 + $0x110] sm:$0xf]  ;;  %1814 = vmatpush.bf16.msrb.mxu1 %v2864_v20  ;;  %v2832_v35 = vor.u32 %v3026_v48, %v2831_v21  ;;  %v2809_v43 = vld [vmem:[#allocation4 + $0x168] sm:$0xf0]  ;;  %v2868_v48 = vor.u32 %v3033_v5, %v2865_v54 }
 0x3b1   :  { %v3614_v45 = vpop.f32.mrf.mxu0  ;;  %v2768_v51 = vor.u32 %v3010_v39, %v2767_v19 }
 0x3b2   :  { %v1151_v33 = vadd.f32 %v3598_v13, %v1080_v58  ;;  %1844 = vmatpush.bf16.msrb.mxu2 %v2708_v26  ;;  %v2759_v13 = vld [vmem:[#allocation4 + $0x100] sm:$0xf]  ;;  %v2804_v26 = vor.u32 %v3017_v17, %v2801_v30 }
 0x3b3   :  { %1804 = vmatpush.bf16.msrb.mxu3 %v2776_v29  ;;  %v2823_v58 = vld [vmem:[#allocation4 + $0x180] sm:$0xf]  ;;  %v2812_v29 = vor.u32 %v3019_v16, %v2809_v43  ;;  %v3031_v16 = vld [vmem:[#allocation4 + $0x1c4] sm:$0xf] }
 0x3b4   :  { %v3618_v49 = vadd.f32 %v3592_v52, %v1151_v33  ;;  %v2760_v52 = vor.u32 %v3008_v2, %v2759_v13  ;;  %1815 = vmatpush.bf16.msrb.mxu1 %v2856_v55  ;;  %v2824_v37 = vor.u32 %v3024_v27, %v2823_v58  ;;  %v1285_v33 = vadd.f32 %v3589_v36, %v3584_v1  ;;  %v1883_v1 = vld [vmem:[%s3809_s9 + $0x30] sm:$0xff]  ;;  %v1880_v27 = vld [vmem:[%s3809_s9 + $0x18] sm:$0xff] }
 0x3b5   :  { %1900 = vmatpush.msrb.mxu0 %v1883_v1  ;;  %v2788_v2 = vor.u32 %v3013_v44, %v2785_v8  ;;  %v2833_v44 = vld [vmem:[#allocation4 + $0x198] sm:$0xf0] }
 0x3b6   :  { %1845 = vmatpush.bf16.msrb.mxu2 %v2700_v9  ;;  %v3037_v9 = vld [vmem:[#allocation4 + $0x1f4] sm:$0xf] }
 0x3b7   :  { %v1072_v46 = vpop.f32.mrf.mxu2  ;;  %1805 = vmatpush.bf16.msrb.mxu3 %v2768_v51  ;;  %v2793_v51 = vld [vmem:[#allocation4 + $0x148] sm:$0xf0]  ;;  %1901 = vmatpush.msrb.mxu0 %v1881_v47 }
 0x3b8   :  { %1816 = vmatpush.bf16.msrb.mxu1 %v2848_v32  ;;  %v2796_v15 = vor.u32 %v3015_v40, %v2793_v51  ;;  %v2881_v46 = vld [vmem:[#allocation4 + $0x1f8] sm:$0xf0]  ;;  %v2873_v32 = vld [vmem:[#allocation4 + $0x1e8] sm:$0xf0] }
 0x3b9   :  { %v3620_v34 = vpop.f32.mrf.mxu0  ;;  %v2884_v14 = vor.u32 %v3037_v9, %v2881_v46  ;;  %v2876_v12 = vor.u32 %v3035_v11, %v2873_v32  ;;  %v1878_v40 = vld [vmem:[%s3809_s9 + $0x8] sm:$0xff]  ;;  %v3023_v9 = vld [vmem:[#allocation4 + $0x184] sm:$0xf] }
 0x3ba   :  { %1986 = vmatpush.msra.mxu2 %v1883_v1  ;;  %v1289_v8 = vadd.f32 %v3620_v34, %v3618_v49  ;;  %v2825_v46 = vld [vmem:[#allocation4 + $0x188] sm:$0xf0] }
 0x3bb   :  { %1806 = vmatpush.bf16.msrb.mxu3 %v2760_v52  ;;  %v3011_v52 = vld [vmem:[#allocation4 + $0x124] sm:$0xf] }
 0x3bc   :  { %1817 = vmatpush.bf16.msrb.mxu1 %v2840_v3  ;;  %1987 = vmatpush.msra.mxu2 %v1881_v47  ;;  %v1877_v3 = vld [vmem:[%s3809_s9] sm:$0xff] }
 0x3bf   :  { %v1331_v53 = vpop.f32.mrf.mxu2 }
 0x3c0   :  { %v1350_v62 = vadd.f32 %v1331_v53, %v1283_v57  ;;  %1818 = vmatpush.bf16.msrb.mxu1 %v2832_v35  ;;  %v1879_v57 = vld [vmem:[%s3809_s9 + $0x10] sm:$0xff]  ;;  %v1286_v53 = vadd.f32 %v3600_v25, %v3595_v60  ;;  %v1287_v60 = vadd.f32 %v3607_v59, %v3604_v38  ;;  %v1884_v25 = vld [vmem:[%s3809_s9 + $0x38] sm:$0xff]  ;;  %v3007_v35 = vld [vmem:[#allocation4 + $0x104] sm:$0xf] }
 0x3c1   :  { %v1281_v63 = vpop.f32.mrf.mxu0  ;;  %1902 = vmatpush.msrb.mxu0 %v1879_v57  ;;  %1988 = vmatpush.msra.mxu2 %v1879_v57  ;;  %v1882_v38 = vld [vmem:[%s3809_s9 + $0x28] sm:$0xff] }
 0x3c2   :  { %v1361_v0 = vadd.f32 %v3627_v23, %v1350_v62  ;;  %v2780_v62 = vor.u32 %v3011_v52, %v2777_v56 }
 0x3c3   :  { %1903 = vmatpush.msrb.mxu0 %v1877_v3  ;;  %1989 = vmatpush.msra.mxu2 %v1877_v3 }
 0x3c4   :  { %v1368_v6 = vmax.f32 %v1361_v0, 0.0  ;;  %1819 = vmatpush.bf16.msrb.mxu1 %v2824_v37  ;;  %v2769_v0 = vld [vmem:[#allocation4 + $0x118] sm:$0xf0] }
 0x3c5   :  { %v2772_v21 = vor.u32 %v3009_v50, %v2769_v0  ;;  %v1447_v50 = vld [vmem:[%s3808_s8] sm:$0x3]  ;;  %s3181_s8 = smov 32  }
 0x3c6   :  { %v1375_v10 = vmax.f32 %v1368_v6, 0.0  ;;  %v1449_v3 = vperm.slane %v1447_v50, 0  ;;  %v1450_v0 = vperm.slane %v1447_v50, 1 }
 0x3c7   :  { %v1333_v4 = vpop.f32.mrf.mxu2 }
 0x3c8   :  { %v1379_v22 = vpack.c.bf16 %v1375_v10, %v1375_v10  ;;  %v1351_v42 = vadd.f32 %v1333_v4, %v1284_v28 }
 0x3ca   :  { %1781 = vmatmul.bf16.vlgmr.msra.gmra.mxu3 %v1379_v22  ;;  %1833 = vmatmul.bf16.vlgmr.msra.gmra.mxu0 %v1379_v22  ;;  %v1362_v19 = vadd.f32 %v3627_v23, %v1351_v42  ;;  %v2857_v22 = vld [vmem:[#allocation4 + $0x1c8] sm:$0xf0]  ;;  %v2849_v42 = vld [vmem:[#allocation4 + $0x1b8] sm:$0xf0] }
 0x3cb   :  { %1851 = vmatpush.bf16.msra.mxu3 %v2820_v7  ;;  %v2761_v7 = vld [vmem:[#allocation4 + $0x108] sm:$0xf0]  ;;  %1920 = vmatpush.msra.mxu0 %v1884_v25  ;;  %v2860_v58 = vor.u32 %v3031_v16, %v2857_v22 }
 0x3cc   :  { %v1369_v24 = vmax.f32 %v1362_v19, 0.0  ;;  %v2764_v43 = vor.u32 %v3007_v35, %v2761_v7  ;;  %v2841_v19 = vld [vmem:[#allocation4 + $0x1a8] sm:$0xf0] }
 0x3cd   :  { %1921 = vmatpush.msra.mxu0 %v1882_v38 }
 0x3cf   :  { %v1336_v41 = vpop.f32.mrf.mxu2  ;;  %1852 = vmatpush.bf16.msra.mxu3 %v2812_v29  ;;  %v3029_v29 = vld [vmem:[#allocation4 + $0x1b4] sm:$0xf]  ;;  %1922 = vmatpush.msra.mxu0 %v1880_v27 }
 0x3d0   :  { %v1352_v39 = vadd.f32 %v1336_v41, %v1285_v33  ;;  %v2852_v33 = vor.u32 %v3029_v29, %v2849_v42 }
 0x3d1   :  { %1923 = vmatpush.msra.mxu0 %v1878_v40 }
 0x3d2   :  { %v1363_v61 = vadd.f32 %v3627_v23, %v1352_v39  ;;  %v1288_v39 = vadd.f32 %v3614_v45, %v3611_v31 }
 0x3d3   :  { %1853 = vmatpush.bf16.msra.mxu3 %v2804_v26  ;;  %v3027_v26 = vld [vmem:[#allocation4 + $0x1a4] sm:$0xf] }
 0x3d4   :  { %v1370_v20 = vmax.f32 %v1363_v61, 0.0  ;;  %v2844_v51 = vor.u32 %v3027_v26, %v2841_v19 }
 0x3d6   :  { %v1376_v36 = vmax.f32 %v1369_v24, %v1370_v20 }
 0x3d7   :  { %v1338_v13 = vpop.f32.mrf.mxu2  ;;  %1854 = vmatpush.bf16.msra.mxu3 %v2796_v15  ;;  %v3025_v15 = vld [vmem:[#allocation4 + $0x194] sm:$0xf] }
 0x3d8   :  { %v1380_v55 = vpack.c.bf16 %v1376_v36, %v1376_v36  ;;  %v1353_v63 = vadd.f32 %v1338_v13, %v1286_v53  ;;  %v2836_v31 = vor.u32 %v3025_v15, %v2833_v44  ;;  %v2828_v36 = vor.u32 %v3023_v9, %v2825_v46 }
 0x3da   :  { %1794 = vmatmul.bf16.vlgmr.msra.gmra.mxu1 %v1380_v55  ;;  %1846 = vmatmul.bf16.vlgmr.msrb.gmra.mxu2 %v1380_v55  ;;  %v1364_v10 = vadd.f32 %v3627_v23, %v1353_v63 }
 0x3db   :  { %1855 = vmatpush.bf16.msra.mxu3 %v2788_v2  ;;  %1864 = vmatpush.bf16.msra.mxu1 %v2884_v14 }
 0x3dc   :  { %1904 = vmatmul.f32.vlgmr.msrb.gmra.mxu0 %v3180_v18  ;;  %v1371_v37 = vmax.f32 %v1364_v10, 0.0 }
 0x3df   :  { %v1341_v6 = vpop.f32.mrf.mxu2  ;;  %1856 = vmatpush.bf16.msra.mxu3 %v2780_v62  ;;  %1865 = vmatpush.bf16.msra.mxu1 %v2876_v12 }
 0x3e0   :  { %v1354_v4 = vadd.f32 %v1341_v6, %v1287_v60 }
 0x3e2   :  { %v1365_v59 = vadd.f32 %v3627_v23, %v1354_v4 }
 0x3e3   :  { %1857 = vmatpush.bf16.msra.mxu3 %v2772_v21  ;;  %1866 = vmatpush.bf16.msra.mxu1 %v2868_v48 }
 0x3e4   :  { %v1372_v28 = vmax.f32 %v1365_v59, 0.0  ;;  %1924 = vmatmul.f32.vlgmr.msra.gmra.mxu0 %v3180_v18 }
 0x3e6   :  { %v1377_v17 = vmax.f32 %v1371_v37, %v1372_v28 }
 0x3e7   :  { %v1343_v30 = vpop.f32.mrf.mxu2  ;;  %1858 = vmatpush.bf16.msra.mxu3 %v2764_v43  ;;  %1867 = vmatpush.bf16.msra.mxu1 %v2860_v58 }
 0x3e8   :  { %v1381_v41 = vpack.c.bf16 %v1377_v17, %v1377_v17  ;;  %v1355_v61 = vadd.f32 %v1343_v30, %v1288_v39 }
 0x3ea   :  { %1807 = vmatmul.bf16.vlgmr.msrb.gmra.mxu3 %v1381_v41  ;;  %v1366_v45 = vadd.f32 %v3627_v23, %v1355_v61 }
 0x3eb   :  { %1868 = vmatpush.bf16.msra.mxu1 %v2852_v33  ;;  %2006 = vmatpush.msrb.mxu3 %v1884_v25 }
 0x3ec   :  { %v1373_v13 = vmax.f32 %v1366_v45, 0.0 }
 0x3ed   :  { %2007 = vmatpush.msrb.mxu3 %v1882_v38 }
 0x3ef   :  { %v1346_v24 = vpop.f32.mrf.mxu2  ;;  %1869 = vmatpush.bf16.msra.mxu1 %v2844_v51  ;;  %2008 = vmatpush.msrb.mxu3 %v1880_v27 }
 0x3f0   :  { %v1356_v20 = vadd.f32 %v1346_v24, %v1289_v8 }
 0x3f1   :  { %2009 = vmatpush.msrb.mxu3 %v1878_v40 }
 0x3f2   :  { %v1367_v1 = vadd.f32 %v3627_v23, %v1356_v20 }
 0x3f3   :  { %1870 = vmatpush.bf16.msra.mxu1 %v2836_v31 }
 0x3f4   :  { %v1374_v2 = vmax.f32 %v1367_v1, 0.0 }
 0x3f6   :  { %v1378_v14 = vmax.f32 %v1373_v13, %v1374_v2 }
 0x3f7   :  { %v1348_v52 = vpop.f32.mrf.mxu2  ;;  %1871 = vmatpush.bf16.msra.mxu1 %v2828_v36 }
 0x3f8   :  { %v1382_v49 = vpack.c.bf16 %v1378_v14, %v1378_v14 }
 0x3fa   :  { %1820 = vmatmul.bf16.vlgmr.msrb.gmra.mxu1 %v1382_v49  ;;  %1859 = vmatmul.bf16.vlgmr.msra.gmra.mxu3 %v1381_v41 }
 0x40a   :  { %1872 = vmatmul.bf16.vlgmr.msra.gmra.mxu1 %v1382_v49 }
 0x447   :  { %v1834_v34 = vpop.f32.mrf.mxu0 }
 0x448   :  { %v1835_v25 = vadd.f32 %v1834_v34, %v1450_v0 }
 0x44d   :  { %v1782_v47 = vpop.f32.mrf.mxu3 }
 0x44e   :  { %v1783_v60 = vadd.f32 %v1782_v47, %v1449_v3 }
 0x44f   :  { %v1836_v55 = vpop.f32.mrf.mxu0 }
 0x455   :  { %v1784_v56 = vpop.f32.mrf.mxu3 }
 0x457   :  { %v1795_v11 = vpop.f32.mrf.mxu1 }
 0x458   :  { %v1796_v6 = vadd.f32 %v1795_v11, %v1783_v60 }
 0x459   :  { %v1905_v5 = vpop.f32.mrf.mxu0 }
 0x45d   :  { %v1847_v32 = vpop.f32.mrf.mxu2 }
 0x45e   :  { %v1848_v21 = vadd.f32 %v1847_v32, %v1835_v25 }
 0x45f   :  { %v1797_v57 = vpop.f32.mrf.mxu1 }
 0x461   :  { %v1925_v16 = vpop.f32.mrf.mxu0 }
 0x465   :  { %v1849_v23 = vpop.f32.mrf.mxu2 }
 0x46d   :  { %v1808_v53 = vpop.f32.mrf.mxu3 }
 0x46e   :  { %v1809_v48 = vadd.f32 %v1808_v53, %v1796_v6 }
 0x475   :  { %v1810_v62 = vpop.f32.mrf.mxu3 }
 0x477   :  { %v1821_v12 = vpop.f32.mrf.mxu1 }
 0x478   :  { %v1822_v10 = vadd.f32 %v1821_v12, %v1809_v48  ;;  %v3045_v48 = vld [vmem:[%s3810_s10 + $0x34] sm:$0xf] }
 0x47a   :  { %v1928_v38 = vadd.f32 %v1905_v5, %v1822_v10 }
 0x47d   :  { %v1860_v63 = vpop.f32.mrf.mxu3 }
 0x47e   :  { %v1861_v4 = vadd.f32 %v1860_v63, %v1848_v21 }
 0x47f   :  { %v1823_v54 = vpop.f32.mrf.mxu1 }
 0x485   :  { %v1862_v35 = vpop.f32.mrf.mxu3 }
 0x486   :  { %v2917_v35 = vld [vmem:[%s3810_s10 + $0x38] sm:$0xf0] }
 0x487   :  { %v1873_v7 = vpop.f32.mrf.mxu1 }
 0x488   :  { %v1874_v22 = vadd.f32 %v1873_v7, %v1861_v4  ;;  %v2920_v4 = vor.u32 %v3045_v48, %v2917_v35  ;;  %v3046_v7 = vld [vmem:[%s3810_s10 + $0x34] sm:$0xf0] }
 0x48a   :  { %v1929_v59 = vadd.f32 %v1925_v16, %v1874_v22  ;;  %v3043_v16 = vld [vmem:[%s3810_s10 + $0x24] sm:$0xf]  ;;  %2155 = vmatpush.bf16.msrb.mxu1 %v2920_v4 }
 0x48c   :  { %v1931_v43 = vsel %vm1930_vm5, %v1928_v38, %v1929_v59  ;;  %v2170_v59 = vld [vmem:[%s3812_s12 + $0x30] sm:$0xff] }
 0x48d   :  { %3074 = vtanh.f32 %v1931_v43  ;;  %v2885_v37 = vmul.f32 -1.442695, %v1931_v43  ;;  %v2171_v43 = vld [vmem:[%s3812_s12 + $0x38] sm:$0xff]  ;;  %2184 = vmatpush.msrb.mxu2 %v2170_v59 }
 0x48e   :  { %2204 = vmatpush.msra.mxu3 %v2171_v43 }
 0x48f   :  { %v1875_v58 = vpop.f32.mrf.mxu1  ;;  %3076 = vpow2.f32 %v2885_v37  ;;  %v3044_v37 = vld [vmem:[%s3810_s10 + $0x24] sm:$0xf0] }
 0x490   :  { %v2907_v58 = vld [vmem:[%s3810_s10 + $0x20] sm:$0xf] }
 0x493   :  { %v3075_v27 = vpop.eup %3074 }
 0x494   :  { %1954 = vrot.lane.b32.xlu2 %v3075_v27, %s3159_s16 }
 0x495   :  { %v3077_v28 = vpop.eup %3076 }
 0x496   :  { %v1935_v29 = vadd.f32 1.0, %v3077_v28  ;;  %v2168_v28 = vld [vmem:[%s3812_s12 + $0x20] sm:$0xff] }
 0x497   :  { %2185 = vmatpush.msrb.mxu2 %v2168_v28 }
 0x498   :  { %3078 = vrcp.f32 %v1935_v29  ;;  %v1947_v26 = vand.u32 2147483648, %v1935_v29  ;;  %vm1941_vm7 = vweird.f32 %v1935_v29  ;;  %v1945_v19 = vand.u32 2147483647, %v1935_v29 }
 0x49a   :  { %v1948_v40 = vor.u32 1.1754944e-38, %v1947_v26  ;;  %vm1946_vm9 = vcmp.eq.f32.partialorder %v1945_v19, 8.507059e+37  ;;  %v2899_v26 = vld [vmem:[%s3810_s10 + $0x10] sm:$0xf]  ;;  %v3042_v19 = vld [vmem:[%s3810_s10 + $0x14] sm:$0xf0] }
 0x49e   :  { %v3079_v42 = vpop.eup %3078 }
 0x49f   :  { %v1937_v17 = vmul.f32 %v3079_v42, %v1935_v29  ;;  %vm1942_vm6 = vweird.f32 %v3079_v42  ;;  %v2169_v29 = vld [vmem:[%s3812_s12 + $0x28] sm:$0xff] }
 0x4a0   :  { %vm1943_vm8 = vmor %vm1941_vm7, %vm1942_vm6  ;;  %2205 = vmatpush.msra.mxu3 %v2169_v29 }
 0x4a1   :  { %v1938_v30 = vsub.f32 1.0, %v1937_v17  ;;  %v3041_v17 = vld [vmem:[%s3810_s10 + $0x14] sm:$0xf] }
 0x4a3   :  { %v1939_v33 = vmul.f32 %v3079_v42, %v1938_v30  ;;  %v2901_v30 = vld [vmem:[%s3810_s10 + $0x18] sm:$0xf0] }
 0x4a5   :  { %v1940_v41 = vadd.f32 %v3079_v42, %v1939_v33  ;;  %v2166_v33 = vld [vmem:[%s3812_s12 + $0x10] sm:$0xff] }
 0x4a6   :  { %2186 = vmatpush.msrb.mxu2 %v2166_v33 }
 0x4a7   :  { %v1944_v39 = vsel %vm1943_vm8, %v3079_v42, %v1940_v41  ;;  %v2908_v42 = vor.u32 %v3044_v37, %v2907_v58  ;;  %v2167_v41 = vld [vmem:[%s3812_s12 + $0x18] sm:$0xff] }
 0x4a8   :  { %v1949_v61 = vsel %vm1946_vm9, %v1948_v40, %v1944_v39  ;;  %v2164_v39 = vld [vmem:[%s3812_s12] sm:$0xff]  ;;  %v2904_v40 = vor.u32 %v3041_v17, %v2901_v30  ;;  %2206 = vmatpush.msra.mxu3 %v2167_v41 }
 0x4a9   :  { %v1952_v44 = vmul.f32 0.0, %v1949_v61  ;;  %2187 = vmatpush.msrb.mxu2 %v2164_v39 }
 0x4ee   :  { %v1955_v51 = vpop.permute.xlu2 %1954 }
 0x4ef   :  { %v1957_v15 = vmul.f32 %v1955_v51, %v1949_v61  ;;  %v2165_v51 = vld [vmem:[%s3812_s12 + $0x8] sm:$0xff] }
 0x4f0   :  { %2207 = vmatpush.msra.mxu3 %v2165_v51 }
 0x4f1   :  { %1959 = vrot.lane.b32.xlu0 %v1957_v15, %s3181_s8  ;;  %v3039_v15 = vld [vmem:[%s3810_s10 + $0x4] sm:$0xf] }
 0x563   :  { %v1960_v8 = vpop.permute.xlu0 %1959 }
 0x564   :  { %v1962_v24 = vadd.f32 %v1960_v8, %v1952_v44  ;;  %v2893_v44 = vld [vmem:[%s3810_s10 + $0x8] sm:$0xf0] }
 0x565   :  { %v2896_v8 = vor.u32 %v3039_v15, %v2893_v44 }
 0x566   :  { %3080 = vtanh.f32 %v1962_v24 }
 0x56c   :  { %v3081_v31 = vpop.eup %3080 }
 0x56d   :  { %1965 = vrot.lane.b32.xlu1 %v3081_v31, %s3159_s16 }
 0x5df   :  { %v1966_v45 = vpop.permute.xlu1 %1965 }
 0x5e0   :  { %v3681_v20 = vmul.f32 %v1966_v45, %v1949_v61  ;;  %v2900_v61 = vor.u32 %v3042_v19, %v2899_v26 }
 0x5e2   :  { %1970 = vrot.lane.b32.xlu2 %v3681_v20, %s3181_s8 }
 0x63c   :  { %v1971_v9 = vpop.permute.xlu2 %1970 }
 0x63d   :  { %2886 = vmatmul.msk.f32.vlgmr.msra.gmra.mxu2 %vm281_vm3, %v1971_v9  ;;  %2887 = vmatmul.msk.f32.vlgmr.msrb.gmra.mxu3 %vm281_vm3, %v1971_v9 }
 0x63e   :  { %2269 = vmatpush.msra.mxu2 %v2170_v59  ;;  %2289 = vmatpush.msrb.mxu3 %v2171_v43 }
 0x640   :  { %2270 = vmatpush.msra.mxu2 %v2168_v28  ;;  %2290 = vmatpush.msrb.mxu3 %v2169_v29 }
 0x642   :  { %2271 = vmatpush.msra.mxu2 %v2166_v33  ;;  %2291 = vmatpush.msrb.mxu3 %v2167_v41 }
 0x644   :  { %2272 = vmatpush.msra.mxu2 %v2164_v39  ;;  %2292 = vmatpush.msrb.mxu3 %v2165_v51 }
 0x645   :  { %2188 = vmatmul.f32.vlgmr.msrb.gmra.mxu2 %v3180_v18  ;;  %2208 = vmatmul.f32.vlgmr.msra.gmra.mxu3 %v3180_v18 }
 0x6c0   :  { %v1991_v46 = vpop.f32.mrf.mxu2  ;;  %v2011_v1 = vpop.f32.mrf.mxu3 }
 0x6c1   :  { %v2015_v36 = vrot.slane %v1991_v46, 4  ;;  %v2019_v13 = vrot.slane %v2011_v1, 4  ;;  %v2891_v46 = vld [vmem:[%s3810_s10] sm:$0xf]  ;;  %v3040_v1 = vld [vmem:[%s3810_s10 + $0x4] sm:$0xf0] }
 0x6c3   :  { %v2017_v2 = vadd.f32 %v2015_v36, %v1822_v10  ;;  %v2021_v14 = vadd.f32 %v2019_v13, %v1874_v22  ;;  %v2915_v10 = vld [vmem:[%s3810_s10 + $0x30] sm:$0xf]  ;;  %v2909_v22 = vld [vmem:[%s3810_s10 + $0x28] sm:$0xf0]  ;;  %v2892_v36 = vor.u32 %v3040_v1, %v2891_v46 }
 0x6c4   :  { %v2916_v38 = vor.u32 %v3046_v7, %v2915_v10  ;;  %v2912_v27 = vor.u32 %v3043_v16, %v2909_v22 }
 0x6c5   :  { %v2023_v52 = vrot.slane %v2017_v2, 4  ;;  %v2026_v49 = vrot.slane %v2021_v14, 4 }
 0x6c6   :  { %2142 = vmatpush.bf16.msrb.mxu0 %v2916_v38  ;;  %2156 = vmatpush.bf16.msrb.mxu1 %v2912_v27 }
 0x6c7   :  { %v2028_v34 = vsel %vm1930_vm5, %v2023_v52, %v2026_v49 }
 0x6c8   :  { %3082 = vtanh.f32 %v2028_v34  ;;  %v2888_v55 = vmul.f32 -1.442695, %v2028_v34 }
 0x6ca   :  { %3084 = vpow2.f32 %v2888_v55  ;;  %2143 = vmatpush.bf16.msrb.mxu0 %v2908_v42  ;;  %2157 = vmatpush.bf16.msrb.mxu1 %v2904_v40  ;;  %v2209_v55 = vpop.f32.mrf.mxu3 }
 0x6ce   :  { %v3083_v47 = vpop.eup %3082  ;;  %2144 = vmatpush.bf16.msrb.mxu0 %v2900_v61  ;;  %2158 = vmatpush.bf16.msrb.mxu1 %v2896_v8 }
 0x6cf   :  { %2051 = vrot.lane.b32.xlu0 %v3083_v47, %s3159_s16  ;;  %v2189_v47 = vpop.f32.mrf.mxu2 }
 0x6d0   :  { %v3085_v56 = vpop.eup %3084 }
 0x6d1   :  { %v2032_v11 = vadd.f32 1.0, %v3085_v56 }
 0x6d2   :  { %2145 = vmatpush.bf16.msrb.mxu0 %v2892_v36 }
 0x6d3   :  { %3086 = vrcp.f32 %v2032_v11  ;;  %v2044_v12 = vand.u32 2147483648, %v2032_v11  ;;  %vm2038_vm11 = vweird.f32 %v2032_v11  ;;  %v2042_v50 = vand.u32 2147483647, %v2032_v11 }
 0x6d5   :  { %v2045_v63 = vor.u32 1.1754944e-38, %v2044_v12  ;;  %vm2043_vm13 = vcmp.eq.f32.partialorder %v2042_v50, 8.507059e+37 }
 0x6d9   :  { %v3087_v32 = vpop.eup %3086 }
 0x6da   :  { %v2034_v57 = vmul.f32 %v3087_v32, %v2032_v11  ;;  %vm2039_vm10 = vweird.f32 %v3087_v32 }
 0x6db   :  { %vm2040_vm12 = vmor %vm2038_vm11, %vm2039_vm10 }
 0x6dc   :  { %v2035_v23 = vsub.f32 1.0, %v2034_v57 }
 0x6de   :  { %v2036_v53 = vmul.f32 %v3087_v32, %v2035_v23 }
 0x6e0   :  { %v2037_v62 = vadd.f32 %v3087_v32, %v2036_v53 }
 0x6e2   :  { %v2041_v3 = vsel %vm2040_vm12, %v3087_v32, %v2037_v62 }
 0x6e3   :  { %v3689_v5 = vsel %vm2043_vm13, %v2045_v63, %v2041_v3 }
 0x6e4   :  { %v2049_v60 = vmul.f32 %v3689_v5, %v1962_v24 }
 0x741   :  { %v2052_v0 = vpop.permute.xlu0 %2051 }
 0x742   :  { %v2054_v54 = vmul.f32 %v2052_v0, %v3689_v5 }
 0x744   :  { %2056 = vrot.lane.b32.xlu1 %v2054_v54, %s3181_s8 }
 0x7b6   :  { %v2057_v25 = vpop.permute.xlu1 %2056 }
 0x7b7   :  { %v2059_v6 = vadd.f32 %v2057_v25, %v2049_v60 }
 0x7b9   :  { %3088 = vtanh.f32 %v2059_v6 }
 0x7bf   :  { %v3089_v21 = vpop.eup %3088 }
 0x7c0   :  { %2062 = vrot.lane.b32.xlu2 %v3089_v21, %s3159_s16 }
 0x81a   :  { %v2063_v24 = vpop.permute.xlu2 %2062 }
 0x81b   :  { %v2065_v31 = vmul.f32 %v2063_v24, %v3689_v5 }
 0x81d   :  { %v2067_v45 = vrot.slane %v2065_v31, 4 }
 0x81f   :  { %v2070_v9 = vsel %vm1930_vm5, %v2067_v45, %v3681_v20  ;;  %v2069_v18 = vsel %vm1930_vm5, %v3681_v20, %v2067_v45  ;;  %v2089_v20 = vld [vmem:[%s3811_s11] sm:$0x3] }
 0x820   :  { %2076 = vrot.lane.b32.xlu1 %v2070_v9, %s3159_s16  ;;  %2072 = vrot.lane.b32.xlu0 %v2069_v18, %s3181_s8  ;;  %v2091_v49 = vperm.slane %v2089_v20, 0  ;;  %v2092_v34 = vperm.slane %v2089_v20, 1 }
 0x892   :  { %v2077_v13 = vpop.permute.xlu1 %2076  ;;  %v2073_v2 = vpop.permute.xlu0 %2072 }
 0x893   :  { %v2079_v14 = vsel %vm281_vm3, %v2073_v2, %v2077_v13 }
 0x894   :  { %v2080_v52 = vpack.c.bf16 %v2079_v14, %v2079_v14 }
 0x896   :  { %2921 = vmatmul.msk.bf16.vlgmr.msrb.gmra.mxu0 %vm833_vm4, %v2080_v52  ;;  %2922 = vmatmul.msk.bf16.vlgmr.msrb.gmra.mxu1 %vm833_vm4, %v2080_v52 }
 0x913   :  { %v2147_v56 = vpop.f32.mrf.mxu0  ;;  %v2160_v11 = vpop.f32.mrf.mxu1 }
 0x914   :  { %v2148_v32 = vadd.f32 %v2147_v56, %v2091_v49  ;;  %v2161_v57 = vadd.f32 %v2160_v11, %v2092_v34 }
 0x916   :  { %v2212_v23 = vadd.f32 %v2189_v47, %v2148_v32  ;;  %v2213_v53 = vadd.f32 %v2209_v55, %v2161_v57 }
 0x918   :  { %v2214_v62 = vsel %vm1930_vm5, %v2212_v23, %v2213_v53 }
 0x919   :  { %3090 = vtanh.f32 %v2214_v62  ;;  %v2923_v63 = vmul.f32 -1.442695, %v2214_v62 }
 0x91b   :  { %v2149_v12 = vpop.f32.mrf.mxu0  ;;  %v2162_v50 = vpop.f32.mrf.mxu1  ;;  %3092 = vpow2.f32 %v2923_v63 }
 0x91f   :  { %v3091_v3 = vpop.eup %3090 }
 0x920   :  { %2237 = vrot.lane.b32.xlu2 %v3091_v3, %s3159_s16 }
 0x921   :  { %v3093_v0 = vpop.eup %3092 }
 0x922   :  { %v2218_v5 = vadd.f32 1.0, %v3093_v0 }
 0x924   :  { %3094 = vrcp.f32 %v2218_v5  ;;  %v2230_v48 = vand.u32 2147483648, %v2218_v5  ;;  %vm2224_vm15 = vweird.f32 %v2218_v5  ;;  %v2228_v35 = vand.u32 2147483647, %v2218_v5 }
 0x926   :  { %v2231_v4 = vor.u32 1.1754944e-38, %v2230_v48  ;;  %vm2229_vm1 = vcmp.eq.f32.partialorder %v2228_v35, 8.507059e+37 }
 0x92a   :  { %v3095_v54 = vpop.eup %3094 }
 0x92b   :  { %v2220_v60 = vmul.f32 %v3095_v54, %v2218_v5  ;;  %vm2225_vm14 = vweird.f32 %v3095_v54 }
 0x92c   :  { %vm2226_vm0 = vmor %vm2224_vm15, %vm2225_vm14 }
 0x92d   :  { %v2221_v25 = vsub.f32 1.0, %v2220_v60 }
 0x92f   :  { %v2222_v6 = vmul.f32 %v3095_v54, %v2221_v25 }
 0x931   :  { %v2223_v21 = vadd.f32 %v3095_v54, %v2222_v6 }
 0x933   :  { %v2227_v10 = vsel %vm2226_vm0, %v3095_v54, %v2223_v21 }
 0x934   :  { %v2232_v16 = vsel %vm2229_vm1, %v2231_v4, %v2227_v10 }
 0x935   :  { %v2235_v38 = vmul.f32 0.0, %v2232_v16 }
 0x97a   :  { %v2238_v7 = vpop.permute.xlu2 %2237 }
 0x97b   :  { %v2240_v22 = vmul.f32 %v2238_v7, %v2232_v16 }
 0x97d   :  { %2242 = vrot.lane.b32.xlu0 %v2240_v22, %s3181_s8 }
 0x9ef   :  { %v2243_v59 = vpop.permute.xlu0 %2242 }
 0x9f0   :  { %v2245_v43 = vadd.f32 %v2243_v59, %v2235_v38 }
 0x9f2   :  { %3096 = vtanh.f32 %v2245_v43 }
 0x9f8   :  { %v3097_v58 = vpop.eup %3096 }
 0x9f9   :  { %2248 = vrot.lane.b32.xlu1 %v3097_v58, %s3159_s16 }
 0xa6b   :  { %v2249_v27 = vpop.permute.xlu1 %2248 }
 0xa6c   :  { %v2251_v37 = vmul.f32 %v2249_v27, %v2232_v16 }
 0xa6e   :  { %2253 = vrot.lane.b32.xlu2 %v2251_v37, %s3181_s8 }
 0xac8   :  { %v2254_v28 = vpop.permute.xlu2 %2253 }
 0xac9   :  { %2924 = vmatmul.msk.f32.vlgmr.msra.gmra.mxu2 %vm281_vm3, %v2254_v28  ;;  %2925 = vmatmul.msk.f32.vlgmr.msrb.gmra.mxu3 %vm281_vm3, %v2254_v28 }
 0xb4c   :  { %v2274_v29 = vpop.f32.mrf.mxu2  ;;  %v2294_v42 = vpop.f32.mrf.mxu3 }
 0xb4d   :  { %v2298_v17 = vrot.slane %v2274_v29, 4  ;;  %v2302_v30 = vrot.slane %v2294_v42, 4 }
 0xb4f   :  { %v2300_v33 = vadd.f32 %v2298_v17, %v2148_v32  ;;  %v2304_v41 = vadd.f32 %v2302_v30, %v2161_v57 }
 0xb51   :  { %v2306_v26 = vrot.slane %v2300_v33, 4  ;;  %v2309_v19 = vrot.slane %v2304_v41, 4 }
 0xb53   :  { %v2311_v39 = vsel %vm1930_vm5, %v2306_v26, %v2309_v19 }
 0xb54   :  { %3098 = vtanh.f32 %v2311_v39  ;;  %v2926_v51 = vmul.f32 -1.442695, %v2311_v39 }
 0xb56   :  { %3100 = vpow2.f32 %v2926_v51 }
 0xb5a   :  { %v3099_v40 = vpop.eup %3098 }
 0xb5b   :  { %2334 = vrot.lane.b32.xlu0 %v3099_v40, %s3159_s16 }
 0xb5c   :  { %v3101_v61 = vpop.eup %3100 }
 0xb5d   :  { %v2315_v15 = vadd.f32 1.0, %v3101_v61 }
 0xb5f   :  { %3102 = vrcp.f32 %v2315_v15  ;;  %v2327_v9 = vand.u32 2147483648, %v2315_v15  ;;  %vm2321_vm4 = vweird.f32 %v2315_v15  ;;  %v2325_v18 = vand.u32 2147483647, %v2315_v15 }
 0xb61   :  { %v2328_v1 = vor.u32 1.1754944e-38, %v2327_v9  ;;  %vm2326_vm7 = vcmp.eq.f32.partialorder %v2325_v18, 8.507059e+37 }
 0xb65   :  { %v3103_v44 = vpop.eup %3102 }
 0xb66   :  { %v2317_v8 = vmul.f32 %v3103_v44, %v2315_v15  ;;  %vm2322_vm2 = vweird.f32 %v3103_v44 }
 0xb67   :  { %vm2323_vm6 = vmor %vm2321_vm4, %vm2322_vm2 }
 0xb68   :  { %v2318_v24 = vsub.f32 1.0, %v2317_v8 }
 0xb6a   :  { %v2319_v31 = vmul.f32 %v3103_v44, %v2318_v24 }
 0xb6c   :  { %v2320_v45 = vadd.f32 %v3103_v44, %v2319_v31 }
 0xb6e   :  { %v2324_v46 = vsel %vm2323_vm6, %v3103_v44, %v2320_v45 }
 0xb6f   :  { %v2329_v13 = vsel %vm2326_vm7, %v2328_v1, %v2324_v46 }
 0xb70   :  { %v2332_v14 = vmul.f32 %v2329_v13, %v2245_v43 }
 0xbcd   :  { %v2335_v36 = vpop.permute.xlu0 %2334 }
 0xbce   :  { %v2337_v2 = vmul.f32 %v2335_v36, %v2329_v13 }
 0xbd0   :  { %2339 = vrot.lane.b32.xlu1 %v2337_v2, %s3181_s8 }
 0xc42   :  { %v2340_v52 = vpop.permute.xlu1 %2339 }
 0xc43   :  { %v2342_v20 = vadd.f32 %v2340_v52, %v2332_v14 }
 0xc45   :  { %3104 = vtanh.f32 %v2342_v20 }
 0xc4b   :  { %v3105_v49 = vpop.eup %3104 }
 0xc4c   :  { %2345 = vrot.lane.b32.xlu2 %v3105_v49, %s3159_s16 }
 0xca6   :  { %v2346_v34 = vpop.permute.xlu2 %2345 }
 0xca7   :  { %v2348_v47 = vmul.f32 %v2346_v34, %v2329_v13 }
 0xca9   :  { %v2350_v55 = vrot.slane %v2348_v47, 4 }
 0xcab   :  { %v2352_v56 = vsel %vm1930_vm5, %v2251_v37, %v2350_v55  ;;  %v2353_v11 = vsel %vm1930_vm5, %v2350_v55, %v2251_v37 }
 0xcac   :  { %v2354_v32 = vadd.f32 %v2353_v11, %v2352_v56 }
 0xcae   :  { %2356 = vrot.lane.b32.xlu0 %v2354_v32, %s3181_s8 }
 0xd20   :  { %v2357_v57 = vpop.permute.xlu0 %2356 }
 0xd21   :  { %2359 = vst.msk [vmem:[%s3813_s13] sm:$0xff] %vm281_vm3, %v2357_v57 }
 0xd22   :  { %2364 = vsyncpa [#allocation3], 1 }
 0xd23   :  { %2365 = vsyncpa [#allocation5], 1 }

</bundles_post_ra>
